<compile_context>
chip_gen: v7x
topology: tpu7x:2x2x1
jax: 0.10.0
libtpu: 0.0.40
codegen_flags: <defaults>
</compile_context>

<pallas_src>
import jax
import jax.numpy as jnp
from jax import lax
from jax.experimental import pallas as pl
from jax.experimental.pallas import tpu as pltpu


def _round_up(n, m):
    return (n + m - 1) // m * m


def lstm_classifier_kernel(x_ref, w_ih_ref, w_hh_ref, b_ref, w_d_ref, b_d_ref,
                           out_ref, xg_sc):
    Bp = out_ref.shape[0]
    Hp = w_hh_ref.shape[0]
    T = xg_sc.shape[0] // Bp

    # Phase 1: batched input projection for ALL timesteps in one MXU matmul,
    # with the (b_ih + b_hh) bias folded in once. bf16 operands, f32 accumulate.
    xg_sc[...] = (
        jnp.dot(x_ref[...], w_ih_ref[...], preferred_element_type=jnp.float32)
        + b_ref[...])

    # Phase 2: sequential recurrence over the resident gate slab.
    # h/c live in vregs as loop carries (f32); only the gate-slab row is read from VMEM.
    def step(t, carry):
        h, c = carry
        row = pl.multiple_of(t * Bp, Bp)
        gates = xg_sc[pl.ds(row, Bp), :] + jnp.dot(
            h.astype(jnp.bfloat16), w_hh_ref[...],
            preferred_element_type=jnp.float32)
        # PyTorch gate order [i, f, g, o]; slices are 128-lane aligned (Hp = 128k).
        i_g = jax.nn.sigmoid(gates[:, 0 * Hp:1 * Hp])
        f_g = jax.nn.sigmoid(gates[:, 1 * Hp:2 * Hp])
        g_g = jnp.tanh(gates[:, 2 * Hp:3 * Hp])
        o_g = jax.nn.sigmoid(gates[:, 3 * Hp:4 * Hp])
        c_new = f_g * c + i_g * g_g
        h_new = o_g * jnp.tanh(c_new)
        return (h_new, c_new)

    h0 = jnp.zeros((Bp, Hp), jnp.float32)
    c0 = jnp.zeros((Bp, Hp), jnp.float32)
    h_n, _ = lax.fori_loop(0, T, step, (h0, c0), unroll=True)

    # Phase 3: classifier head + sigmoid into a lane-dense (Bp, 128k) output tile.
    logits = (jnp.dot(h_n.astype(jnp.bfloat16), w_d_ref[...],
                      preferred_element_type=jnp.float32) + b_d_ref[...])
    out_ref[...] = jax.nn.sigmoid(logits)


def lstm_classifier(x, w_ih, w_hh, b_ih, b_hh, w_dense, b_dense):
    """x: (B, T, D). PyTorch-layout params:
       w_ih (4H, D), w_hh (4H, H), b_ih (4H,), b_hh (4H,),
       w_dense (target, H), b_dense (target,)."""
    B, T, D = x.shape
    H = w_hh.shape[1]
    TGT = w_dense.shape[0]

    Bp = _round_up(B, 8)        # sublane-aligned batch
    Dp = _round_up(D, 128)      # lane-aligned input dim
    Hp = _round_up(H, 128)      # lane-aligned hidden dim (per-gate)
    TGTp = _round_up(TGT, 128)  # lane-dense output

    f32 = jnp.float32
    bf16 = jnp.bfloat16

    # x -> time-major padded slab (T*Bp, Dp): rows for timestep t are contiguous.
    x_p = jnp.zeros((Bp, T, Dp), f32).at[:B, :, :D].set(x.astype(f32))
    x2d = jnp.swapaxes(x_p, 0, 1).reshape(T * Bp, Dp).astype(bf16)

    # W_ih (4H, D) -> per-gate padded, transposed to (Dp, 4*Hp) [gate-major columns].
    w_ih4 = jnp.zeros((4, Hp, Dp), f32).at[:, :H, :D].set(
        w_ih.astype(f32).reshape(4, H, D))
    w_ih_t = jnp.transpose(w_ih4, (2, 0, 1)).reshape(Dp, 4 * Hp).astype(bf16)

    # W_hh (4H, H) -> (Hp, 4*Hp).
    w_hh4 = jnp.zeros((4, Hp, Hp), f32).at[:, :H, :H].set(
        w_hh.astype(f32).reshape(4, H, H))
    w_hh_t = jnp.transpose(w_hh4, (2, 0, 1)).reshape(Hp, 4 * Hp).astype(bf16)

    # Combined bias, gate-padded, f32 (added once in the precompute pass).
    b4 = jnp.zeros((4, Hp), f32).at[:, :H].set(
        (b_ih + b_hh).astype(f32).reshape(4, H))
    b = b4.reshape(1, 4 * Hp)

    # Dense head, padded: (Hp, TGTp) and (1, TGTp).
    w_d_t = jnp.zeros((Hp, TGTp), f32).at[:H, :TGT].set(
        jnp.transpose(w_dense).astype(f32)).astype(bf16)
    b_d = jnp.zeros((1, TGTp), f32).at[0, :TGT].set(b_dense.astype(f32))

    out_p = pl.pallas_call(
        lstm_classifier_kernel,
        out_shape=jax.ShapeDtypeStruct((Bp, TGTp), f32),
        grid_spec=pltpu.PrefetchScalarGridSpec(
            num_scalar_prefetch=0,
            grid=(1,),
            in_specs=[
                pl.BlockSpec((T * Bp, Dp), lambda i: (0, 0)),      # x slab (time-major)
                pl.BlockSpec((Dp, 4 * Hp), lambda i: (0, 0)),      # W_ih^T (bf16)
                pl.BlockSpec((Hp, 4 * Hp), lambda i: (0, 0)),      # W_hh^T (bf16)
                pl.BlockSpec((1, 4 * Hp), lambda i: (0, 0)),       # combined bias (f32)
                pl.BlockSpec((Hp, TGTp), lambda i: (0, 0)),        # W_dense^T (bf16)
                pl.BlockSpec((1, TGTp), lambda i: (0, 0)),         # b_dense (f32)
            ],
            out_specs=pl.BlockSpec((Bp, TGTp), lambda i: (0, 0)),
            scratch_shapes=[
                pltpu.VMEM((T * Bp, 4 * Hp), f32),   # precomputed X gates (all timesteps)
            ],
        ),
        compiler_params=pltpu.CompilerParams(
            dimension_semantics=("arbitrary",),
            vmem_limit_bytes=32 * 1024 * 1024),
    )(x2d, w_ih_t, w_hh_t, b, w_d_t, b_d)

    return out_p[:B, :TGT]


def lstm_classifier_ref(x, w_ih, w_hh, b_ih, b_hh, w_dense, b_dense):
    """Pure-JAX f32 reference matching torch.nn.LSTM semantics."""
    B, T, D = x.shape
    H = w_hh.shape[1]

    def step(carry, x_t):
        h, c = carry
        gates = x_t @ w_ih.T + h @ w_hh.T + b_ih + b_hh
        i = jax.nn.sigmoid(gates[:, 0 * H:1 * H])
        f = jax.nn.sigmoid(gates[:, 1 * H:2 * H])
        g = jnp.tanh(gates[:, 2 * H:3 * H])
        o = jax.nn.sigmoid(gates[:, 3 * H:4 * H])
        c = f * c + i * g
        h = o * jnp.tanh(c)
        return (h, c), None

    h0 = jnp.zeros((B, H), jnp.float32)
    c0 = jnp.zeros((B, H), jnp.float32)
    (h_n, _), _ = lax.scan(step, (h0, c0), jnp.swapaxes(x, 0, 1))
    return jax.nn.sigmoid(h_n @ w_dense.T + b_dense)


if __name__ == "__main__":
    # Small shapes consistent with the module: batch=2, seq=8, input=16, hidden=32, target=4
    B, T, D, H, TGT = 2, 8, 16, 32, 4

    key = jax.random.PRNGKey(0)
    keys = jax.random.split(key, 7)
    bound = 1.0 / jnp.sqrt(H)

    x = jax.random.normal(keys[0], (B, T, D), jnp.float32)
    w_ih = jax.random.uniform(keys[1], (4 * H, D), jnp.float32, -bound, bound)
    w_hh = jax.random.uniform(keys[2], (4 * H, H), jnp.float32, -bound, bound)
    b_ih = jax.random.uniform(keys[3], (4 * H,), jnp.float32, -bound, bound)
    b_hh = jax.random.uniform(keys[4], (4 * H,), jnp.float32, -bound, bound)
    w_dense = jax.random.uniform(keys[5], (TGT, H), jnp.float32, -bound, bound)
    b_dense = jax.random.uniform(keys[6], (TGT,), jnp.float32, -bound, bound)

    out = lstm_classifier(x, w_ih, w_hh, b_ih, b_hh, w_dense, b_dense)
    out = jax.block_until_ready(out)

    ref = lstm_classifier_ref(x, w_ih, w_hh, b_ih, b_hh, w_dense, b_dense)
    assert out.shape == (B, TGT)
    # bf16 MXU operands with f32 accumulation -> loosened tolerance vs f32 reference.
    assert jnp.allclose(out, ref, atol=2e-2, rtol=2e-2), "mismatch vs reference"

    print("KERNEL_OK")
</pallas_src>

<mosaic_0001>
module attributes {stable_mosaic.version = 11 : i64} {
  func.func @lstm_classifier_kernel(%arg0: i32, %arg1: memref<64x128xbf16, #tpu.memory_space<vmem>>, %arg2: memref<128x512xbf16, #tpu.memory_space<vmem>>, %arg3: memref<128x512xbf16, #tpu.memory_space<vmem>>, %arg4: memref<1x512xf32, #tpu.memory_space<vmem>>, %arg5: memref<128x128xbf16, #tpu.memory_space<vmem>>, %arg6: memref<1x128xf32, #tpu.memory_space<vmem>>, %arg7: memref<8x128xf32, #tpu.memory_space<vmem>>, %arg8: memref<64x512xf32, #tpu.memory_space<vmem>>) attributes {dimension_semantics = [#tpu.dimension_semantics<arbitrary>], iteration_bounds = array<i64: 1>, scalar_prefetch = 0 : i64, scratch_operands = 1 : i64, tpu.core_type = #tpu.core_type<tc>, window_params = [{pipeline_mode = #tpu.pipeline_mode<synchronous>, transform_indices = @transform_0, window_bounds = array<i64: 64, 128>}, {pipeline_mode = #tpu.pipeline_mode<synchronous>, transform_indices = @transform_1, window_bounds = array<i64: 128, 512>}, {pipeline_mode = #tpu.pipeline_mode<synchronous>, transform_indices = @transform_2, window_bounds = array<i64: 128, 512>}, {pipeline_mode = #tpu.pipeline_mode<synchronous>, transform_indices = @transform_3, window_bounds = array<i64: 1, 512>}, {pipeline_mode = #tpu.pipeline_mode<synchronous>, transform_indices = @transform_4, window_bounds = array<i64: 128, 128>}, {pipeline_mode = #tpu.pipeline_mode<synchronous>, transform_indices = @transform_5, window_bounds = array<i64: 1, 128>}, {pipeline_mode = #tpu.pipeline_mode<synchronous>, transform_indices = @transform_6, window_bounds = array<i64: 8, 128>}]} {
    %c0 = arith.constant 0 : index
    %c0_0 = arith.constant 0 : index
    %0 = vector.load %arg1[%c0, %c0_0] : memref<64x128xbf16, #tpu.memory_space<vmem>>, vector<64x128xbf16>
    %c0_1 = arith.constant 0 : index
    %c0_2 = arith.constant 0 : index
    %1 = vector.load %arg2[%c0_1, %c0_2] : memref<128x512xbf16, #tpu.memory_space<vmem>>, vector<128x512xbf16>
    %cst = arith.constant dense<0.000000e+00> : vector<64x512xf32>
    %2 = tpu.matmul %0, %1, %cst {dimension_numbers = #tpu.dot_dimension_numbers<[1], [0], [0], [1], [0, 0, 1, 1], [], []>} : vector<64x128xbf16>, vector<128x512xbf16>, vector<64x512xf32> -> vector<64x512xf32>
    %c0_3 = arith.constant 0 : index
    %c0_4 = arith.constant 0 : index
    %3 = vector.load %arg4[%c0_3, %c0_4] : memref<1x512xf32, #tpu.memory_space<vmem>>, vector<1x512xf32>
    %4 = vector.broadcast %3 : vector<1x512xf32> to vector<64x512xf32>
    %5 = arith.addf %2, %4 : vector<64x512xf32>
    %c0_5 = arith.constant 0 : index
    %c0_6 = arith.constant 0 : index
    %6 = vector.load %arg8[%c0_5, %c0_6] : memref<64x512xf32, #tpu.memory_space<vmem>>, vector<64x512xf32>
    tpu.vector_store %arg8[%c0_5, %c0_6], %5 {strides = array<i32>} : memref<64x512xf32, #tpu.memory_space<vmem>>, vector<64x512xf32>,
    %cst_7 = arith.constant 0.000000e+00 : f32
    %7 = vector.broadcast %cst_7 : f32 to vector<8x128xf32>
    %cst_8 = arith.constant 0.000000e+00 : f32
    %8 = vector.broadcast %cst_8 : f32 to vector<8x128xf32>
    %c0_i32 = arith.constant 0 : i32
    %c8_i32 = arith.constant 8 : i32
    %9 = arith.muli %c0_i32, %c8_i32 : i32
    %10 = tpu.assume_multiple %9, 8 : i32
    %11 = arith.index_cast %10 : i32 to index
    %c0_9 = arith.constant 0 : index
    %12 = vector.load %arg8[%11, %c0_9] : memref<64x512xf32, #tpu.memory_space<vmem>>, vector<8x512xf32>
    %13 = arith.truncf %7 : vector<8x128xf32> to vector<8x128xbf16>
    %c0_10 = arith.constant 0 : index
    %c0_11 = arith.constant 0 : index
    %14 = vector.load %arg3[%c0_10, %c0_11] : memref<128x512xbf16, #tpu.memory_space<vmem>>, vector<128x512xbf16>
    %cst_12 = arith.constant dense<0.000000e+00> : vector<8x512xf32>
    %15 = tpu.matmul %13, %14, %cst_12 {dimension_numbers = #tpu.dot_dimension_numbers<[1], [0], [0], [1], [0, 0, 1, 1], [], []>} : vector<8x128xbf16>, vector<128x512xbf16>, vector<8x512xf32> -> vector<8x512xf32>
    %16 = arith.addf %12, %15 : vector<8x512xf32>
    %17 = vector.extract_strided_slice %16 {offsets = [0, 0], sizes = [8, 128], strides = [1, 1]} : vector<8x512xf32> to vector<8x128xf32>
    %18 = arith.negf %17 : vector<8x128xf32>
    %19 = math.exp %18 : vector<8x128xf32>
    %cst_13 = arith.constant 1.000000e+00 : f32
    %20 = vector.broadcast %cst_13 : f32 to vector<8x128xf32>
    %21 = arith.addf %20, %19 : vector<8x128xf32>
    %22 = arith.divf %20, %21 : vector<8x128xf32>
    %23 = vector.extract_strided_slice %16 {offsets = [0, 128], sizes = [8, 128], strides = [1, 1]} : vector<8x512xf32> to vector<8x128xf32>
    %24 = arith.negf %23 : vector<8x128xf32>
    %25 = math.exp %24 : vector<8x128xf32>
    %cst_14 = arith.constant 1.000000e+00 : f32
    %26 = vector.broadcast %cst_14 : f32 to vector<8x128xf32>
    %27 = arith.addf %26, %25 : vector<8x128xf32>
    %28 = arith.divf %26, %27 : vector<8x128xf32>
    %29 = vector.extract_strided_slice %16 {offsets = [0, 256], sizes = [8, 128], strides = [1, 1]} : vector<8x512xf32> to vector<8x128xf32>
    %30 = math.tanh %29 : vector<8x128xf32>
    %31 = vector.extract_strided_slice %16 {offsets = [0, 384], sizes = [8, 128], strides = [1, 1]} : vector<8x512xf32> to vector<8x128xf32>
    %32 = arith.negf %31 : vector<8x128xf32>
    %33 = math.exp %32 : vector<8x128xf32>
    %cst_15 = arith.constant 1.000000e+00 : f32
    %34 = vector.broadcast %cst_15 : f32 to vector<8x128xf32>
    %35 = arith.addf %34, %33 : vector<8x128xf32>
    %36 = arith.divf %34, %35 : vector<8x128xf32>
    %37 = arith.mulf %28, %8 : vector<8x128xf32>
    %38 = arith.mulf %22, %30 : vector<8x128xf32>
    %39 = arith.addf %37, %38 : vector<8x128xf32>
    %40 = math.tanh %39 : vector<8x128xf32>
    %41 = arith.mulf %36, %40 : vector<8x128xf32>
    %c1_i32 = arith.constant 1 : i32
    %c8_i32_16 = arith.constant 8 : i32
    %42 = arith.muli %c1_i32, %c8_i32_16 : i32
    %43 = tpu.assume_multiple %42, 8 : i32
    %44 = arith.index_cast %43 : i32 to index
    %c0_17 = arith.constant 0 : index
    %45 = vector.load %arg8[%44, %c0_17] : memref<64x512xf32, #tpu.memory_space<vmem>>, vector<8x512xf32>
    %46 = arith.truncf %41 : vector<8x128xf32> to vector<8x128xbf16>
    %c0_18 = arith.constant 0 : index
    %c0_19 = arith.constant 0 : index
    %47 = vector.load %arg3[%c0_18, %c0_19] : memref<128x512xbf16, #tpu.memory_space<vmem>>, vector<128x512xbf16>
    %cst_20 = arith.constant dense<0.000000e+00> : vector<8x512xf32>
    %48 = tpu.matmul %46, %47, %cst_20 {dimension_numbers = #tpu.dot_dimension_numbers<[1], [0], [0], [1], [0, 0, 1, 1], [], []>} : vector<8x128xbf16>, vector<128x512xbf16>, vector<8x512xf32> -> vector<8x512xf32>
    %49 = arith.addf %45, %48 : vector<8x512xf32>
    %50 = vector.extract_strided_slice %49 {offsets = [0, 0], sizes = [8, 128], strides = [1, 1]} : vector<8x512xf32> to vector<8x128xf32>
    %51 = arith.negf %50 : vector<8x128xf32>
    %52 = math.exp %51 : vector<8x128xf32>
    %cst_21 = arith.constant 1.000000e+00 : f32
    %53 = vector.broadcast %cst_21 : f32 to vector<8x128xf32>
    %54 = arith.addf %53, %52 : vector<8x128xf32>
    %55 = arith.divf %53, %54 : vector<8x128xf32>
    %56 = vector.extract_strided_slice %49 {offsets = [0, 128], sizes = [8, 128], strides = [1, 1]} : vector<8x512xf32> to vector<8x128xf32>
    %57 = arith.negf %56 : vector<8x128xf32>
    %58 = math.exp %57 : vector<8x128xf32>
    %cst_22 = arith.constant 1.000000e+00 : f32
    %59 = vector.broadcast %cst_22 : f32 to vector<8x128xf32>
    %60 = arith.addf %59, %58 : vector<8x128xf32>
    %61 = arith.divf %59, %60 : vector<8x128xf32>
    %62 = vector.extract_strided_slice %49 {offsets = [0, 256], sizes = [8, 128], strides = [1, 1]} : vector<8x512xf32> to vector<8x128xf32>
    %63 = math.tanh %62 : vector<8x128xf32>
    %64 = vector.extract_strided_slice %49 {offsets = [0, 384], sizes = [8, 128], strides = [1, 1]} : vector<8x512xf32> to vector<8x128xf32>
    %65 = arith.negf %64 : vector<8x128xf32>
    %66 = math.exp %65 : vector<8x128xf32>
    %cst_23 = arith.constant 1.000000e+00 : f32
    %67 = vector.broadcast %cst_23 : f32 to vector<8x128xf32>
    %68 = arith.addf %67, %66 : vector<8x128xf32>
    %69 = arith.divf %67, %68 : vector<8x128xf32>
    %70 = arith.mulf %61, %39 : vector<8x128xf32>
    %71 = arith.mulf %55, %63 : vector<8x128xf32>
    %72 = arith.addf %70, %71 : vector<8x128xf32>
    %73 = math.tanh %72 : vector<8x128xf32>
    %74 = arith.mulf %69, %73 : vector<8x128xf32>
    %c2_i32 = arith.constant 2 : i32
    %c8_i32_24 = arith.constant 8 : i32
    %75 = arith.muli %c2_i32, %c8_i32_24 : i32
    %76 = tpu.assume_multiple %75, 8 : i32
    %77 = arith.index_cast %76 : i32 to index
    %c0_25 = arith.constant 0 : index
    %78 = vector.load %arg8[%77, %c0_25] : memref<64x512xf32, #tpu.memory_space<vmem>>, vector<8x512xf32>
    %79 = arith.truncf %74 : vector<8x128xf32> to vector<8x128xbf16>
    %c0_26 = arith.constant 0 : index
    %c0_27 = arith.constant 0 : index
    %80 = vector.load %arg3[%c0_26, %c0_27] : memref<128x512xbf16, #tpu.memory_space<vmem>>, vector<128x512xbf16>
    %cst_28 = arith.constant dense<0.000000e+00> : vector<8x512xf32>
    %81 = tpu.matmul %79, %80, %cst_28 {dimension_numbers = #tpu.dot_dimension_numbers<[1], [0], [0], [1], [0, 0, 1, 1], [], []>} : vector<8x128xbf16>, vector<128x512xbf16>, vector<8x512xf32> -> vector<8x512xf32>
    %82 = arith.addf %78, %81 : vector<8x512xf32>
    %83 = vector.extract_strided_slice %82 {offsets = [0, 0], sizes = [8, 128], strides = [1, 1]} : vector<8x512xf32> to vector<8x128xf32>
    %84 = arith.negf %83 : vector<8x128xf32>
    %85 = math.exp %84 : vector<8x128xf32>
    %cst_29 = arith.constant 1.000000e+00 : f32
    %86 = vector.broadcast %cst_29 : f32 to vector<8x128xf32>
    %87 = arith.addf %86, %85 : vector<8x128xf32>
    %88 = arith.divf %86, %87 : vector<8x128xf32>
    %89 = vector.extract_strided_slice %82 {offsets = [0, 128], sizes = [8, 128], strides = [1, 1]} : vector<8x512xf32> to vector<8x128xf32>
    %90 = arith.negf %89 : vector<8x128xf32>
    %91 = math.exp %90 : vector<8x128xf32>
    %cst_30 = arith.constant 1.000000e+00 : f32
    %92 = vector.broadcast %cst_30 : f32 to vector<8x128xf32>
    %93 = arith.addf %92, %91 : vector<8x128xf32>
    %94 = arith.divf %92, %93 : vector<8x128xf32>
    %95 = vector.extract_strided_slice %82 {offsets = [0, 256], sizes = [8, 128], strides = [1, 1]} : vector<8x512xf32> to vector<8x128xf32>
    %96 = math.tanh %95 : vector<8x128xf32>
    %97 = vector.extract_strided_slice %82 {offsets = [0, 384], sizes = [8, 128], strides = [1, 1]} : vector<8x512xf32> to vector<8x128xf32>
    %98 = arith.negf %97 : vector<8x128xf32>
    %99 = math.exp %98 : vector<8x128xf32>
    %cst_31 = arith.constant 1.000000e+00 : f32
    %100 = vector.broadcast %cst_31 : f32 to vector<8x128xf32>
    %101 = arith.addf %100, %99 : vector<8x128xf32>
    %102 = arith.divf %100, %101 : vector<8x128xf32>
    %103 = arith.mulf %94, %72 : vector<8x128xf32>
    %104 = arith.mulf %88, %96 : vector<8x128xf32>
    %105 = arith.addf %103, %104 : vector<8x128xf32>
    %106 = math.tanh %105 : vector<8x128xf32>
    %107 = arith.mulf %102, %106 : vector<8x128xf32>
    %c3_i32 = arith.constant 3 : i32
    %c8_i32_32 = arith.constant 8 : i32
    %108 = arith.muli %c3_i32, %c8_i32_32 : i32
    %109 = tpu.assume_multiple %108, 8 : i32
    %110 = arith.index_cast %109 : i32 to index
    %c0_33 = arith.constant 0 : index
    %111 = vector.load %arg8[%110, %c0_33] : memref<64x512xf32, #tpu.memory_space<vmem>>, vector<8x512xf32>
    %112 = arith.truncf %107 : vector<8x128xf32> to vector<8x128xbf16>
    %c0_34 = arith.constant 0 : index
    %c0_35 = arith.constant 0 : index
    %113 = vector.load %arg3[%c0_34, %c0_35] : memref<128x512xbf16, #tpu.memory_space<vmem>>, vector<128x512xbf16>
    %cst_36 = arith.constant dense<0.000000e+00> : vector<8x512xf32>
    %114 = tpu.matmul %112, %113, %cst_36 {dimension_numbers = #tpu.dot_dimension_numbers<[1], [0], [0], [1], [0, 0, 1, 1], [], []>} : vector<8x128xbf16>, vector<128x512xbf16>, vector<8x512xf32> -> vector<8x512xf32>
    %115 = arith.addf %111, %114 : vector<8x512xf32>
    %116 = vector.extract_strided_slice %115 {offsets = [0, 0], sizes = [8, 128], strides = [1, 1]} : vector<8x512xf32> to vector<8x128xf32>
    %117 = arith.negf %116 : vector<8x128xf32>
    %118 = math.exp %117 : vector<8x128xf32>
    %cst_37 = arith.constant 1.000000e+00 : f32
    %119 = vector.broadcast %cst_37 : f32 to vector<8x128xf32>
    %120 = arith.addf %119, %118 : vector<8x128xf32>
    %121 = arith.divf %119, %120 : vector<8x128xf32>
    %122 = vector.extract_strided_slice %115 {offsets = [0, 128], sizes = [8, 128], strides = [1, 1]} : vector<8x512xf32> to vector<8x128xf32>
    %123 = arith.negf %122 : vector<8x128xf32>
    %124 = math.exp %123 : vector<8x128xf32>
    %cst_38 = arith.constant 1.000000e+00 : f32
    %125 = vector.broadcast %cst_38 : f32 to vector<8x128xf32>
    %126 = arith.addf %125, %124 : vector<8x128xf32>
    %127 = arith.divf %125, %126 : vector<8x128xf32>
    %128 = vector.extract_strided_slice %115 {offsets = [0, 256], sizes = [8, 128], strides = [1, 1]} : vector<8x512xf32> to vector<8x128xf32>
    %129 = math.tanh %128 : vector<8x128xf32>
    %130 = vector.extract_strided_slice %115 {offsets = [0, 384], sizes = [8, 128], strides = [1, 1]} : vector<8x512xf32> to vector<8x128xf32>
    %131 = arith.negf %130 : vector<8x128xf32>
    %132 = math.exp %131 : vector<8x128xf32>
    %cst_39 = arith.constant 1.000000e+00 : f32
    %133 = vector.broadcast %cst_39 : f32 to vector<8x128xf32>
    %134 = arith.addf %133, %132 : vector<8x128xf32>
    %135 = arith.divf %133, %134 : vector<8x128xf32>
    %136 = arith.mulf %127, %105 : vector<8x128xf32>
    %137 = arith.mulf %121, %129 : vector<8x128xf32>
    %138 = arith.addf %136, %137 : vector<8x128xf32>
    %139 = math.tanh %138 : vector<8x128xf32>
    %140 = arith.mulf %135, %139 : vector<8x128xf32>
    %c4_i32 = arith.constant 4 : i32
    %c8_i32_40 = arith.constant 8 : i32
    %141 = arith.muli %c4_i32, %c8_i32_40 : i32
    %142 = tpu.assume_multiple %141, 8 : i32
    %143 = arith.index_cast %142 : i32 to index
    %c0_41 = arith.constant 0 : index
    %144 = vector.load %arg8[%143, %c0_41] : memref<64x512xf32, #tpu.memory_space<vmem>>, vector<8x512xf32>
    %145 = arith.truncf %140 : vector<8x128xf32> to vector<8x128xbf16>
    %c0_42 = arith.constant 0 : index
    %c0_43 = arith.constant 0 : index
    %146 = vector.load %arg3[%c0_42, %c0_43] : memref<128x512xbf16, #tpu.memory_space<vmem>>, vector<128x512xbf16>
    %cst_44 = arith.constant dense<0.000000e+00> : vector<8x512xf32>
    %147 = tpu.matmul %145, %146, %cst_44 {dimension_numbers = #tpu.dot_dimension_numbers<[1], [0], [0], [1], [0, 0, 1, 1], [], []>} : vector<8x128xbf16>, vector<128x512xbf16>, vector<8x512xf32> -> vector<8x512xf32>
    %148 = arith.addf %144, %147 : vector<8x512xf32>
    %149 = vector.extract_strided_slice %148 {offsets = [0, 0], sizes = [8, 128], strides = [1, 1]} : vector<8x512xf32> to vector<8x128xf32>
    %150 = arith.negf %149 : vector<8x128xf32>
    %151 = math.exp %150 : vector<8x128xf32>
    %cst_45 = arith.constant 1.000000e+00 : f32
    %152 = vector.broadcast %cst_45 : f32 to vector<8x128xf32>
    %153 = arith.addf %152, %151 : vector<8x128xf32>
    %154 = arith.divf %152, %153 : vector<8x128xf32>
    %155 = vector.extract_strided_slice %148 {offsets = [0, 128], sizes = [8, 128], strides = [1, 1]} : vector<8x512xf32> to vector<8x128xf32>
    %156 = arith.negf %155 : vector<8x128xf32>
    %157 = math.exp %156 : vector<8x128xf32>
    %cst_46 = arith.constant 1.000000e+00 : f32
    %158 = vector.broadcast %cst_46 : f32 to vector<8x128xf32>
    %159 = arith.addf %158, %157 : vector<8x128xf32>
    %160 = arith.divf %158, %159 : vector<8x128xf32>
    %161 = vector.extract_strided_slice %148 {offsets = [0, 256], sizes = [8, 128], strides = [1, 1]} : vector<8x512xf32> to vector<8x128xf32>
    %162 = math.tanh %161 : vector<8x128xf32>
    %163 = vector.extract_strided_slice %148 {offsets = [0, 384], sizes = [8, 128], strides = [1, 1]} : vector<8x512xf32> to vector<8x128xf32>
    %164 = arith.negf %163 : vector<8x128xf32>
    %165 = math.exp %164 : vector<8x128xf32>
    %cst_47 = arith.constant 1.000000e+00 : f32
    %166 = vector.broadcast %cst_47 : f32 to vector<8x128xf32>
    %167 = arith.addf %166, %165 : vector<8x128xf32>
    %168 = arith.divf %166, %167 : vector<8x128xf32>
    %169 = arith.mulf %160, %138 : vector<8x128xf32>
    %170 = arith.mulf %154, %162 : vector<8x128xf32>
    %171 = arith.addf %169, %170 : vector<8x128xf32>
    %172 = math.tanh %171 : vector<8x128xf32>
    %173 = arith.mulf %168, %172 : vector<8x128xf32>
    %c5_i32 = arith.constant 5 : i32
    %c8_i32_48 = arith.constant 8 : i32
    %174 = arith.muli %c5_i32, %c8_i32_48 : i32
    %175 = tpu.assume_multiple %174, 8 : i32
    %176 = arith.index_cast %175 : i32 to index
    %c0_49 = arith.constant 0 : index
    %177 = vector.load %arg8[%176, %c0_49] : memref<64x512xf32, #tpu.memory_space<vmem>>, vector<8x512xf32>
    %178 = arith.truncf %173 : vector<8x128xf32> to vector<8x128xbf16>
    %c0_50 = arith.constant 0 : index
    %c0_51 = arith.constant 0 : index
    %179 = vector.load %arg3[%c0_50, %c0_51] : memref<128x512xbf16, #tpu.memory_space<vmem>>, vector<128x512xbf16>
    %cst_52 = arith.constant dense<0.000000e+00> : vector<8x512xf32>
    %180 = tpu.matmul %178, %179, %cst_52 {dimension_numbers = #tpu.dot_dimension_numbers<[1], [0], [0], [1], [0, 0, 1, 1], [], []>} : vector<8x128xbf16>, vector<128x512xbf16>, vector<8x512xf32> -> vector<8x512xf32>
    %181 = arith.addf %177, %180 : vector<8x512xf32>
    %182 = vector.extract_strided_slice %181 {offsets = [0, 0], sizes = [8, 128], strides = [1, 1]} : vector<8x512xf32> to vector<8x128xf32>
    %183 = arith.negf %182 : vector<8x128xf32>
    %184 = math.exp %183 : vector<8x128xf32>
    %cst_53 = arith.constant 1.000000e+00 : f32
    %185 = vector.broadcast %cst_53 : f32 to vector<8x128xf32>
    %186 = arith.addf %185, %184 : vector<8x128xf32>
    %187 = arith.divf %185, %186 : vector<8x128xf32>
    %188 = vector.extract_strided_slice %181 {offsets = [0, 128], sizes = [8, 128], strides = [1, 1]} : vector<8x512xf32> to vector<8x128xf32>
    %189 = arith.negf %188 : vector<8x128xf32>
    %190 = math.exp %189 : vector<8x128xf32>
    %cst_54 = arith.constant 1.000000e+00 : f32
    %191 = vector.broadcast %cst_54 : f32 to vector<8x128xf32>
    %192 = arith.addf %191, %190 : vector<8x128xf32>
    %193 = arith.divf %191, %192 : vector<8x128xf32>
    %194 = vector.extract_strided_slice %181 {offsets = [0, 256], sizes = [8, 128], strides = [1, 1]} : vector<8x512xf32> to vector<8x128xf32>
    %195 = math.tanh %194 : vector<8x128xf32>
    %196 = vector.extract_strided_slice %181 {offsets = [0, 384], sizes = [8, 128], strides = [1, 1]} : vector<8x512xf32> to vector<8x128xf32>
    %197 = arith.negf %196 : vector<8x128xf32>
    %198 = math.exp %197 : vector<8x128xf32>
    %cst_55 = arith.constant 1.000000e+00 : f32
    %199 = vector.broadcast %cst_55 : f32 to vector<8x128xf32>
    %200 = arith.addf %199, %198 : vector<8x128xf32>
    %201 = arith.divf %199, %200 : vector<8x128xf32>
    %202 = arith.mulf %193, %171 : vector<8x128xf32>
    %203 = arith.mulf %187, %195 : vector<8x128xf32>
    %204 = arith.addf %202, %203 : vector<8x128xf32>
    %205 = math.tanh %204 : vector<8x128xf32>
    %206 = arith.mulf %201, %205 : vector<8x128xf32>
    %c6_i32 = arith.constant 6 : i32
    %c8_i32_56 = arith.constant 8 : i32
    %207 = arith.muli %c6_i32, %c8_i32_56 : i32
    %208 = tpu.assume_multiple %207, 8 : i32
    %209 = arith.index_cast %208 : i32 to index
    %c0_57 = arith.constant 0 : index
    %210 = vector.load %arg8[%209, %c0_57] : memref<64x512xf32, #tpu.memory_space<vmem>>, vector<8x512xf32>
    %211 = arith.truncf %206 : vector<8x128xf32> to vector<8x128xbf16>
    %c0_58 = arith.constant 0 : index
    %c0_59 = arith.constant 0 : index
    %212 = vector.load %arg3[%c0_58, %c0_59] : memref<128x512xbf16, #tpu.memory_space<vmem>>, vector<128x512xbf16>
    %cst_60 = arith.constant dense<0.000000e+00> : vector<8x512xf32>
    %213 = tpu.matmul %211, %212, %cst_60 {dimension_numbers = #tpu.dot_dimension_numbers<[1], [0], [0], [1], [0, 0, 1, 1], [], []>} : vector<8x128xbf16>, vector<128x512xbf16>, vector<8x512xf32> -> vector<8x512xf32>
    %214 = arith.addf %210, %213 : vector<8x512xf32>
    %215 = vector.extract_strided_slice %214 {offsets = [0, 0], sizes = [8, 128], strides = [1, 1]} : vector<8x512xf32> to vector<8x128xf32>
    %216 = arith.negf %215 : vector<8x128xf32>
    %217 = math.exp %216 : vector<8x128xf32>
    %cst_61 = arith.constant 1.000000e+00 : f32
    %218 = vector.broadcast %cst_61 : f32 to vector<8x128xf32>
    %219 = arith.addf %218, %217 : vector<8x128xf32>
    %220 = arith.divf %218, %219 : vector<8x128xf32>
    %221 = vector.extract_strided_slice %214 {offsets = [0, 128], sizes = [8, 128], strides = [1, 1]} : vector<8x512xf32> to vector<8x128xf32>
    %222 = arith.negf %221 : vector<8x128xf32>
    %223 = math.exp %222 : vector<8x128xf32>
    %cst_62 = arith.constant 1.000000e+00 : f32
    %224 = vector.broadcast %cst_62 : f32 to vector<8x128xf32>
    %225 = arith.addf %224, %223 : vector<8x128xf32>
    %226 = arith.divf %224, %225 : vector<8x128xf32>
    %227 = vector.extract_strided_slice %214 {offsets = [0, 256], sizes = [8, 128], strides = [1, 1]} : vector<8x512xf32> to vector<8x128xf32>
    %228 = math.tanh %227 : vector<8x128xf32>
    %229 = vector.extract_strided_slice %214 {offsets = [0, 384], sizes = [8, 128], strides = [1, 1]} : vector<8x512xf32> to vector<8x128xf32>
    %230 = arith.negf %229 : vector<8x128xf32>
    %231 = math.exp %230 : vector<8x128xf32>
    %cst_63 = arith.constant 1.000000e+00 : f32
    %232 = vector.broadcast %cst_63 : f32 to vector<8x128xf32>
    %233 = arith.addf %232, %231 : vector<8x128xf32>
    %234 = arith.divf %232, %233 : vector<8x128xf32>
    %235 = arith.mulf %226, %204 : vector<8x128xf32>
    %236 = arith.mulf %220, %228 : vector<8x128xf32>
    %237 = arith.addf %235, %236 : vector<8x128xf32>
    %238 = math.tanh %237 : vector<8x128xf32>
    %239 = arith.mulf %234, %238 : vector<8x128xf32>
    %c7_i32 = arith.constant 7 : i32
    %c8_i32_64 = arith.constant 8 : i32
    %240 = arith.muli %c7_i32, %c8_i32_64 : i32
    %241 = tpu.assume_multiple %240, 8 : i32
    %242 = arith.index_cast %241 : i32 to index
    %c0_65 = arith.constant 0 : index
    %243 = vector.load %arg8[%242, %c0_65] : memref<64x512xf32, #tpu.memory_space<vmem>>, vector<8x512xf32>
    %244 = arith.truncf %239 : vector<8x128xf32> to vector<8x128xbf16>
    %c0_66 = arith.constant 0 : index
    %c0_67 = arith.constant 0 : index
    %245 = vector.load %arg3[%c0_66, %c0_67] : memref<128x512xbf16, #tpu.memory_space<vmem>>, vector<128x512xbf16>
    %cst_68 = arith.constant dense<0.000000e+00> : vector<8x512xf32>
    %246 = tpu.matmul %244, %245, %cst_68 {dimension_numbers = #tpu.dot_dimension_numbers<[1], [0], [0], [1], [0, 0, 1, 1], [], []>} : vector<8x128xbf16>, vector<128x512xbf16>, vector<8x512xf32> -> vector<8x512xf32>
    %247 = arith.addf %243, %246 : vector<8x512xf32>
    %248 = vector.extract_strided_slice %247 {offsets = [0, 0], sizes = [8, 128], strides = [1, 1]} : vector<8x512xf32> to vector<8x128xf32>
    %249 = arith.negf %248 : vector<8x128xf32>
    %250 = math.exp %249 : vector<8x128xf32>
    %cst_69 = arith.constant 1.000000e+00 : f32
    %251 = vector.broadcast %cst_69 : f32 to vector<8x128xf32>
    %252 = arith.addf %251, %250 : vector<8x128xf32>
    %253 = arith.divf %251, %252 : vector<8x128xf32>
    %254 = vector.extract_strided_slice %247 {offsets = [0, 128], sizes = [8, 128], strides = [1, 1]} : vector<8x512xf32> to vector<8x128xf32>
    %255 = arith.negf %254 : vector<8x128xf32>
    %256 = math.exp %255 : vector<8x128xf32>
    %cst_70 = arith.constant 1.000000e+00 : f32
    %257 = vector.broadcast %cst_70 : f32 to vector<8x128xf32>
    %258 = arith.addf %257, %256 : vector<8x128xf32>
    %259 = arith.divf %257, %258 : vector<8x128xf32>
    %260 = vector.extract_strided_slice %247 {offsets = [0, 256], sizes = [8, 128], strides = [1, 1]} : vector<8x512xf32> to vector<8x128xf32>
    %261 = math.tanh %260 : vector<8x128xf32>
    %262 = vector.extract_strided_slice %247 {offsets = [0, 384], sizes = [8, 128], strides = [1, 1]} : vector<8x512xf32> to vector<8x128xf32>
    %263 = arith.negf %262 : vector<8x128xf32>
    %264 = math.exp %263 : vector<8x128xf32>
    %cst_71 = arith.constant 1.000000e+00 : f32
    %265 = vector.broadcast %cst_71 : f32 to vector<8x128xf32>
    %266 = arith.addf %265, %264 : vector<8x128xf32>
    %267 = arith.divf %265, %266 : vector<8x128xf32>
    %268 = arith.mulf %259, %237 : vector<8x128xf32>
    %269 = arith.mulf %253, %261 : vector<8x128xf32>
    %270 = arith.addf %268, %269 : vector<8x128xf32>
    %271 = math.tanh %270 : vector<8x128xf32>
    %272 = arith.mulf %267, %271 : vector<8x128xf32>
    %c8_i32_72 = arith.constant 8 : i32
    %273 = arith.truncf %272 : vector<8x128xf32> to vector<8x128xbf16>
    %c0_73 = arith.constant 0 : index
    %c0_74 = arith.constant 0 : index
    %274 = vector.load %arg5[%c0_73, %c0_74] : memref<128x128xbf16, #tpu.memory_space<vmem>>, vector<128x128xbf16>
    %cst_75 = arith.constant dense<0.000000e+00> : vector<8x128xf32>
    %275 = tpu.matmul %273, %274, %cst_75 {dimension_numbers = #tpu.dot_dimension_numbers<[1], [0], [0], [1], [0, 0, 1, 1], [], []>} : vector<8x128xbf16>, vector<128x128xbf16>, vector<8x128xf32> -> vector<8x128xf32>
    %c0_76 = arith.constant 0 : index
    %c0_77 = arith.constant 0 : index
    %276 = vector.load %arg6[%c0_76, %c0_77] : memref<1x128xf32, #tpu.memory_space<vmem>>, vector<1x128xf32>
    %277 = vector.broadcast %276 : vector<1x128xf32> to vector<8x128xf32>
    %278 = arith.addf %275, %277 : vector<8x128xf32>
    %279 = arith.negf %278 : vector<8x128xf32>
    %280 = math.exp %279 : vector<8x128xf32>
    %cst_78 = arith.constant 1.000000e+00 : f32
    %281 = vector.broadcast %cst_78 : f32 to vector<8x128xf32>
    %282 = arith.addf %281, %280 : vector<8x128xf32>
    %283 = arith.divf %281, %282 : vector<8x128xf32>
    %c0_79 = arith.constant 0 : index
    %c0_80 = arith.constant 0 : index
    %284 = vector.load %arg7[%c0_79, %c0_80] : memref<8x128xf32, #tpu.memory_space<vmem>>, vector<8x128xf32>
    tpu.vector_store %arg7[%c0_79, %c0_80], %283 {strides = array<i32>} : memref<8x128xf32, #tpu.memory_space<vmem>>, vector<8x128xf32>,
    return
  }
  func.func @transform_0(%arg0: i32) -> (i32, i32) {
    %c0_i32 = arith.constant 0 : i32
    %c0_i32_0 = arith.constant 0 : i32
    %c0_i32_1 = arith.constant 0 : i32
    return %c0_i32, %c0_i32_0 : i32, i32
  }
  func.func @transform_1(%arg0: i32) -> (i32, i32) {
    %c0_i32 = arith.constant 0 : i32
    %c0_i32_0 = arith.constant 0 : i32
    %c0_i32_1 = arith.constant 0 : i32
    return %c0_i32, %c0_i32_0 : i32, i32
  }
  func.func @transform_2(%arg0: i32) -> (i32, i32) {
    %c0_i32 = arith.constant 0 : i32
    %c0_i32_0 = arith.constant 0 : i32
    %c0_i32_1 = arith.constant 0 : i32
    return %c0_i32, %c0_i32_0 : i32, i32
  }
  func.func @transform_3(%arg0: i32) -> (i32, i32) {
    %c0_i32 = arith.constant 0 : i32
    %c0_i32_0 = arith.constant 0 : i32
    %c0_i32_1 = arith.constant 0 : i32
    return %c0_i32, %c0_i32_0 : i32, i32
  }
  func.func @transform_4(%arg0: i32) -> (i32, i32) {
    %c0_i32 = arith.constant 0 : i32
    %c0_i32_0 = arith.constant 0 : i32
    %c0_i32_1 = arith.constant 0 : i32
    return %c0_i32, %c0_i32_0 : i32, i32
  }
  func.func @transform_5(%arg0: i32) -> (i32, i32) {
    %c0_i32 = arith.constant 0 : i32
    %c0_i32_0 = arith.constant 0 : i32
    %c0_i32_1 = arith.constant 0 : i32
    return %c0_i32, %c0_i32_0 : i32, i32
  }
  func.func @transform_6(%arg0: i32) -> (i32, i32) {
    %c0_i32 = arith.constant 0 : i32
    %c0_i32_0 = arith.constant 0 : i32
    %c0_i32_1 = arith.constant 0 : i32
    return %c0_i32, %c0_i32_0 : i32, i32
  }
}

</mosaic_0001>

<bundles_post_ra>
// kernel: tpu_custom_call.1
= control target key start
LH: loop header
LB: loop body
LE: loop exit
PB: predicated region body
PF: predicated region fallthrough
CT: control target
= control target key end

     0   :  { %11 = vsyncpa [#allocation4], 0  ;;  %s2965_s0 = inlined_call_operand.hbm [shape: bf16[64,128], index: 0, kind: input, shape index: {}]   ;;  %s2966_s1 = inlined_call_operand.hbm [shape: bf16[128,512], index: 1, kind: input, shape index: {}]   ;;  %s2967_s2 = inlined_call_operand.hbm [shape: bf16[128,512], index: 2, kind: input, shape index: {}]   ;;  %s2968_s3 = inlined_call_operand.vmem [shape: f32[1,512], index: 3, kind: input, shape index: {}]   ;;  %s2969_s4 = inlined_call_operand.hbm [shape: bf16[128,128], index: 4, kind: input, shape index: {}]   ;;  %s2970_s5 = inlined_call_operand.vmem [shape: f32[1,128], index: 5, kind: input, shape index: {}]   ;;  %s2971_s6 = inlined_call_operand.hbm [shape: f32[8,128], index: 6, kind: output, shape index: {}]  }
   0x1   :  { %12 = vsyncpa [#allocation7], 0 }
   0x2   :  { %13 = vsyncpa [#allocation10], 0 }
   0x3   :  { %14 = vsyncpa [#allocation5], 0  ;;  %s2315_s21 = smov [#allocation6]   ;;  %s2197_s25 = scalar_lea.hbm %s2966_s1, 4096 }
   0x4   :  { %s32_s22 = sshll.u32 %s2315_s21, 4  ;;  %p2198_p0 = scmp.ne.s32.totalorder %s2966_s1, %s2197_s25  ;;  %s33_s22 = int_to_ptr.vmem [resolvable:$true] %s32_s22 }
   0x5   :  { %p2201_p1 = scmp.lt.u32.totalorder %s2197_s25, %s2966_s1 }
   0x7   :  { %p2203_p2 = pnand %p2201_p1, %p2198_p0 }
   0x9   :  { %2206 = shalt.err (!%p2203_p2)
}
   0xa   :  { %s2207_s30 = scalar_lea.vmem %s33_s22, 4096  ;;  %p2212_p4 = scmp.lt.s32.totalorder %s33_s22, %s33_s22 }
   0xb   :  { %p2208_p3 = scmp.ne.s32.totalorder %s33_s22, %s2207_s30  ;;  %p2213_p5 = scmp.lt.s32.totalorder %s2207_s30, %s2207_s30 }
   0xd   :  { %p2214_p6 = por %p2213_p5, %p2212_p4 }
   0xf   :  { %p2215_p7 = pnand %p2214_p6, %p2208_p3 }
  0x11   :  { %2218 = shalt.err (!%p2215_p7)
}
  0x12   :  { %s2316_s7 = smov 256   ;;  %s2317_s8 = smov 16  }
  0x13   :  { %38 = dma.hbm_to_vmem [thread:$0]  %s2966_s1, 4096, %s33_s22, [#allocation7], %s2316_s7, %s2316_s7, %s2317_s8  }
  0x14   :  { %s2318_s11 = smov [#allocation3]   ;;  %s2219_s15 = scalar_lea.hbm %s2965_s0, 512 }
  0x15   :  { %s20_s12 = sshll.u32 %s2318_s11, 4  ;;  %p2220_p8 = scmp.ne.s32.totalorder %s2965_s0, %s2219_s15  ;;  %s21_s12 = int_to_ptr.vmem [resolvable:$true] %s20_s12 }
  0x16   :  { %p2223_p9 = scmp.lt.u32.totalorder %s2219_s15, %s2965_s0 }
  0x18   :  { %p2225_p10 = pnand %p2223_p9, %p2220_p8 }
  0x1a   :  { %2228 = shalt.err (!%p2225_p10)
}
  0x1b   :  { %s2229_s20 = scalar_lea.vmem %s21_s12, 512  ;;  %p2234_p12 = scmp.lt.s32.totalorder %s21_s12, %s21_s12 }
  0x1c   :  { %p2230_p11 = scmp.ne.s32.totalorder %s21_s12, %s2229_s20  ;;  %p2235_p13 = scmp.lt.s32.totalorder %s2229_s20, %s2229_s20 }
  0x1e   :  { %p2236_p0 = por %p2235_p13, %p2234_p12 }
  0x20   :  { %p2237_p1 = pnand %p2236_p0, %p2230_p11 }
  0x22   :  { %2240 = shalt.err (!%p2237_p1)
}
  0x23   :  { %s2319_s1 = smov 64   ;;  %s2320_s21 = smov 4  }
  0x24   :  { %26 = dma.hbm_to_vmem [thread:$0]  %s2965_s0, 512, %s21_s12, [#allocation4], %s2319_s1, %s2319_s1, %s2320_s21  }
  0x25   :  { %s2321_s24 = smov [#allocation8]   ;;  %s2322_s26 = smov [#allocation9]  }
  0x26   :  { %s44_s25 = sshll.u32 %s2321_s24, 4  ;;  %s58_s27 = sshll.u32 %s2322_s26, 4  ;;  %s45_s25 = int_to_ptr.vmem [resolvable:$true] %s44_s25  ;;  %s2392_s27 = int_to_ptr.vmem [resolvable:$true] %s58_s27 }
  0x27   :  { %s2241_s30 = scalar_lea.hbm %s2967_s2, 4096 }
  0x28   :  { %p2242_p2 = scmp.ne.s32.totalorder %s2967_s2, %s2241_s30  ;;  %p2245_p3 = scmp.lt.u32.totalorder %s2241_s30, %s2967_s2 }
  0x2a   :  { %p2247_p4 = pnand %p2245_p3, %p2242_p2 }
  0x2c   :  { %2250 = shalt.err (!%p2247_p4)
}
  0x2d   :  { %s2251_s0 = scalar_lea.vmem %s45_s25, 4096  ;;  %p2256_p6 = scmp.lt.s32.totalorder %s45_s25, %s45_s25 }
  0x2e   :  { %p2252_p5 = scmp.ne.s32.totalorder %s45_s25, %s2251_s0  ;;  %p2257_p7 = scmp.lt.s32.totalorder %s2251_s0, %s2251_s0 }
  0x30   :  { %p2258_p8 = por %p2257_p7, %p2256_p6 }
  0x32   :  { %p2259_p9 = pnand %p2258_p8, %p2252_p5 }
  0x34   :  { %2262 = shalt.err (!%p2259_p9)
}
  0x35   :  { %50 = dma.hbm_to_vmem [thread:$0]  %s2967_s2, 4096, %s45_s25, [#allocation7], %s2316_s7, %s2316_s7, %s2317_s8  }
  0x36   :  { %s2263_s17 = scalar_lea.hbm %s2969_s4, 1024 }
  0x37   :  { %p2264_p10 = scmp.ne.s32.totalorder %s2969_s4, %s2263_s17  ;;  %p2267_p11 = scmp.lt.u32.totalorder %s2263_s17, %s2969_s4 }
  0x39   :  { %p2269_p12 = pnand %p2267_p11, %p2264_p10 }
  0x3b   :  { %2272 = shalt.err (!%p2269_p12)
}
  0x3c   :  { %s2273_s23 = scalar_lea.vmem %s2392_s27, 1024  ;;  %p2278_p0 = scmp.lt.s32.totalorder %s2392_s27, %s2392_s27 }
  0x3d   :  { %p2274_p13 = scmp.ne.s32.totalorder %s2392_s27, %s2273_s23  ;;  %p2279_p1 = scmp.lt.s32.totalorder %s2273_s23, %s2273_s23 }
  0x3f   :  { %p2280_p2 = por %p2279_p1, %p2278_p0 }
  0x41   :  { %p2281_p3 = pnand %p2280_p2, %p2274_p13 }
  0x43   :  { %2284 = shalt.err (!%p2281_p3)
}
  0x44   :  { %64 = dma.hbm_to_vmem [thread:$0]  %s2969_s4, 1024, %s2392_s27, [#allocation10], %s2319_s1, %s2319_s1, %s2320_s21  }
  0x45   :  { %2307 = dma.done.wait [#allocation4], 512  }
  0x46   :  { %2308 = vsyncadd [#allocation4], 4294966784 }
  0x47   :  { %2309 = dma.done.wait [#allocation7], 8192  }
  0x48   :  { %2310 = vsyncadd [#allocation7], 4294959104 }
  0x49   :  { %2311 = dma.done.wait [#allocation10], 1024  }
  0x4a   :  { %2312 = vsyncadd [#allocation10], 4294966272  ;;  %v2972_v0 = vmov 0   ;;  %v1925_v1 = vld [vmem:[#allocation6 + $0x4] ss:$16 sps:$4 sm:$0xff]   ;;  %v1986_v44 = vld [vmem:[#allocation3 + $0x8] sm:$0xff]  }
  0x4b   :  { %358 = vmatprep.mubr.bf16.mxu0 %v2972_v0  ;;  %431 = vmatprep.mubr.bf16.mxu1 %v2972_v0  ;;  %v1927_v2 = vld [vmem:[#allocation6 + $0xc] ss:$16 sps:$4 sm:$0xff]   ;;  %v1929_v3 = vld [vmem:[#allocation6] ss:$16 sps:$4 sm:$0xff]   ;;  %v1930_v4 = vld [vmem:[#allocation6 + $0x8] ss:$16 sps:$4 sm:$0xff]  }
  0x4c   :  { %326 = vmatprep.subr.bf16.mxu0 %v1925_v1  ;;  %399 = vmatprep.subr.bf16.mxu1 %v1927_v2  ;;  %v1931_v5 = vld [vmem:[#allocation6 + $0x24] ss:$16 sps:$4 sm:$0xff]   ;;  %v1933_v6 = vld [vmem:[#allocation6 + $0x2c] ss:$16 sps:$4 sm:$0xff]   ;;  %v1935_v7 = vld [vmem:[#allocation6 + $0x20] ss:$16 sps:$4 sm:$0xff]  }
  0x4d   :  { %327 = vmatpush1.bf16.msra.mxu0 %v1929_v3  ;;  %400 = vmatpush1.bf16.msra.mxu1 %v1930_v4  ;;  %v1936_v8 = vld [vmem:[#allocation6 + $0x28] ss:$16 sps:$4 sm:$0xff]   ;;  %v1937_v9 = vld [vmem:[#allocation6 + $0x44] ss:$16 sps:$4 sm:$0xff]   ;;  %v1939_v10 = vld [vmem:[#allocation6 + $0x4c] ss:$16 sps:$4 sm:$0xff]  }
  0x4e   :  { %328 = vmatprep.subr.bf16.mxu0 %v1931_v5  ;;  %401 = vmatprep.subr.bf16.mxu1 %v1933_v6  ;;  %v1941_v11 = vld [vmem:[#allocation6 + $0x40] ss:$16 sps:$4 sm:$0xff]   ;;  %v1942_v12 = vld [vmem:[#allocation6 + $0x48] ss:$16 sps:$4 sm:$0xff]   ;;  %v1943_v13 = vld [vmem:[#allocation6 + $0x64] ss:$16 sps:$4 sm:$0xff]   ;;  %v122_v6 = vlaneseq }
  0x4f   :  { %v1945_v14 = vld [vmem:[#allocation6 + $0x6c] ss:$16 sps:$4 sm:$0xff]   ;;  %v1947_v15 = vld [vmem:[#allocation6 + $0x60] ss:$16 sps:$4 sm:$0xff]   ;;  %v1948_v16 = vld [vmem:[#allocation6 + $0x68] ss:$16 sps:$4 sm:$0xff]  }
  0x50   :  { %v1949_v17 = vld [vmem:[#allocation6 + $0x84] ss:$16 sps:$4 sm:$0xff]   ;;  %v1951_v18 = vld [vmem:[#allocation6 + $0x8c] ss:$16 sps:$4 sm:$0xff]   ;;  %v1953_v19 = vld [vmem:[#allocation6 + $0x80] ss:$16 sps:$4 sm:$0xff]  }
  0x51   :  { %329 = vmatpush1.bf16.msra.mxu0 %v1935_v7  ;;  %402 = vmatpush1.bf16.msra.mxu1 %v1936_v8  ;;  %v1954_v20 = vld [vmem:[#allocation6 + $0x88] ss:$16 sps:$4 sm:$0xff]   ;;  %v1955_v21 = vld [vmem:[#allocation6 + $0xa4] ss:$16 sps:$4 sm:$0xff]   ;;  %v1957_v22 = vld [vmem:[#allocation6 + $0xac] ss:$16 sps:$4 sm:$0xff]  }
  0x52   :  { %330 = vmatprep.subr.bf16.mxu0 %v1937_v9  ;;  %403 = vmatprep.subr.bf16.mxu1 %v1939_v10  ;;  %v1959_v23 = vld [vmem:[#allocation6 + $0xa0] ss:$16 sps:$4 sm:$0xff]   ;;  %v1960_v24 = vld [vmem:[#allocation6 + $0xa8] ss:$16 sps:$4 sm:$0xff]   ;;  %v1961_v25 = vld [vmem:[#allocation6 + $0xc4] ss:$16 sps:$4 sm:$0xff]  }
  0x53   :  { %v1963_v26 = vld [vmem:[#allocation6 + $0xcc] ss:$16 sps:$4 sm:$0xff]   ;;  %v1965_v27 = vld [vmem:[#allocation6 + $0xc0] ss:$16 sps:$4 sm:$0xff]   ;;  %v1966_v28 = vld [vmem:[#allocation6 + $0xc8] ss:$16 sps:$4 sm:$0xff]  }
  0x54   :  { %v1967_v29 = vld [vmem:[#allocation6 + $0xe4] ss:$16 sps:$4 sm:$0xff]   ;;  %v1969_v30 = vld [vmem:[#allocation6 + $0xec] ss:$16 sps:$4 sm:$0xff]   ;;  %v1971_v31 = vld [vmem:[#allocation6 + $0xe0] ss:$16 sps:$4 sm:$0xff]  }
  0x55   :  { %331 = vmatpush1.bf16.msra.mxu0 %v1941_v11  ;;  %404 = vmatpush1.bf16.msra.mxu1 %v1942_v12  ;;  %v1972_v32 = vld [vmem:[#allocation6 + $0xe8] ss:$16 sps:$4 sm:$0xff]   ;;  %v2431_v33 = vld [vmem:[#allocation8 + $0x4] ss:$16 sps:$4 sm:$0xff]   ;;  %v2433_v34 = vld [vmem:[#allocation8 + $0xc] ss:$16 sps:$4 sm:$0xff]  }
  0x56   :  { %332 = vmatprep.subr.bf16.mxu0 %v1943_v13  ;;  %405 = vmatprep.subr.bf16.mxu1 %v1945_v14  ;;  %v1973_v35 = vld [vmem:[#allocation3] sm:$0xff]   ;;  %v2437_v37 = vld [vmem:[#allocation8 + $0x8] ss:$16 sps:$4 sm:$0xff]   ;;  %v2443_v39 = vld [vmem:[#allocation8 + $0x2c] ss:$16 sps:$4 sm:$0xff]   ;;  %v123_v7 = vshrl.u32 %v122_v6, 7 }
  0x57   :  { %v2435_v36 = vld [vmem:[#allocation8] ss:$16 sps:$4 sm:$0xff]   ;;  %v2441_v38 = vld [vmem:[#allocation8 + $0x24] ss:$16 sps:$4 sm:$0xff]   ;;  %v2449_v41 = vld [vmem:[#allocation8 + $0x28] ss:$16 sps:$4 sm:$0xff]  }
  0x58   :  { %v2445_v40 = vld [vmem:[#allocation8 + $0x20] ss:$16 sps:$4 sm:$0xff]   ;;  %v2453_v42 = vld [vmem:[#allocation8 + $0x44] ss:$16 sps:$4 sm:$0xff]   ;;  %v2455_v43 = vld [vmem:[#allocation8 + $0x4c] ss:$16 sps:$4 sm:$0xff]  }
  0x59   :  { %333 = vmatpush1.bf16.msra.mxu0 %v1947_v15  ;;  %406 = vmatpush1.bf16.msra.mxu1 %v1948_v16  ;;  %v2459_v45 = vld [vmem:[#allocation8 + $0x40] ss:$16 sps:$4 sm:$0xff]   ;;  %v2461_v46 = vld [vmem:[#allocation8 + $0x48] ss:$16 sps:$4 sm:$0xff]   ;;  %v2465_v47 = vld [vmem:[#allocation8 + $0x64] ss:$16 sps:$4 sm:$0xff]  }
  0x5a   :  { %334 = vmatprep.subr.bf16.mxu0 %v1949_v17  ;;  %407 = vmatprep.subr.bf16.mxu1 %v1951_v18  ;;  %v2469_v48 = vld [vmem:[#allocation8 + $0x6c] ss:$16 sps:$4 sm:$0xff]   ;;  %v2471_v49 = vld [vmem:[#allocation8 + $0x60] ss:$16 sps:$4 sm:$0xff]   ;;  %v2473_v50 = vld [vmem:[#allocation8 + $0x68] ss:$16 sps:$4 sm:$0xff]  }
  0x5b   :  { %v2477_v51 = vld [vmem:[#allocation8 + $0x84] ss:$16 sps:$4 sm:$0xff]   ;;  %v2481_v52 = vld [vmem:[#allocation8 + $0x8c] ss:$16 sps:$4 sm:$0xff]   ;;  %v2485_v54 = vld [vmem:[#allocation8 + $0x80] ss:$16 sps:$4 sm:$0xff]  }
  0x5c   :  { %v1999_v53 = vld [vmem:[#allocation3 + $0x10] sm:$0xff]   ;;  %v2487_v55 = vld [vmem:[#allocation8 + $0x88] ss:$16 sps:$4 sm:$0xff]   ;;  %v2491_v57 = vld [vmem:[#allocation8 + $0xac] ss:$16 sps:$4 sm:$0xff]   ;;  %v132_v8 = vsub.s32 2, %v123_v7 }
  0x5d   :  { %335 = vmatpush1.bf16.msra.mxu0 %v1953_v19  ;;  %408 = vmatpush1.bf16.msra.mxu1 %v1954_v20  ;;  %v2489_v56 = vld [vmem:[#allocation8 + $0xa4] ss:$16 sps:$4 sm:$0xff]   ;;  %v2499_v58 = vld [vmem:[#allocation8 + $0xa0] ss:$16 sps:$4 sm:$0xff]   ;;  %v2501_v59 = vld [vmem:[#allocation8 + $0xa8] ss:$16 sps:$4 sm:$0xff]  }
  0x5e   :  { %336 = vmatprep.subr.bf16.mxu0 %v1955_v21  ;;  %409 = vmatprep.subr.bf16.mxu1 %v1957_v22  ;;  %v2505_v60 = vld [vmem:[#allocation8 + $0xc4] ss:$16 sps:$4 sm:$0xff]   ;;  %v2507_v61 = vld [vmem:[#allocation8 + $0xcc] ss:$16 sps:$4 sm:$0xff]   ;;  %v2513_v63 = vld [vmem:[#allocation8 + $0xc0] ss:$16 sps:$4 sm:$0xff]  }
  0x5f   :  { %v2012_v62 = vld [vmem:[#allocation3 + $0x18] sm:$0xff]   ;;  %v2519_v2 = vld [vmem:[#allocation8 + $0xe4] ss:$16 sps:$4 sm:$0xff]   ;;  %v2525_v4 = vld [vmem:[#allocation8 + $0xe0] ss:$16 sps:$4 sm:$0xff]   ;;  %v136_v9 = vsub.s32 3, %v123_v7 }
  0x60   :  { %v2515_v1 = vld [vmem:[#allocation8 + $0xc8] ss:$16 sps:$4 sm:$0xff]   ;;  %v2521_v3 = vld [vmem:[#allocation8 + $0xec] ss:$16 sps:$4 sm:$0xff]   ;;  %v124_v10 = vsub.s32 0, %v123_v7  ;;  %v128_v12 = vsub.s32 1, %v123_v7 }
  0x61   :  { %337 = vmatpush1.bf16.msra.mxu0 %v1959_v23  ;;  %410 = vmatpush1.bf16.msra.mxu1 %v1960_v24  ;;  %v2527_v5 = vld [vmem:[#allocation8 + $0xe8] ss:$16 sps:$4 sm:$0xff]   ;;  %v120_v11 = vld [vmem:[%s2968_s3] sm:$0xf]  ;;  %vm2325_vm0 = vmmov 0   ;;  %s2326_s21 = smov [#allocation11]  }
  0x62   :  { %338 = vmatprep.subr.bf16.mxu0 %v1961_v25  ;;  %411 = vmatprep.subr.bf16.mxu1 %v1963_v26  ;;  %v2576_v13 = vrot.slane %v120_v11, %v132_v8  ;;  %v2582_v16 = vrot.slane %v120_v11, %v136_v9  ;;  %v125_v17 = vrot.slane %v120_v11, %v124_v10  ;;  %s1764_s24 = sshll.u32 %s2326_s21, 4  ;;  %s1765_s24 = int_to_ptr.vmem [resolvable:$true] %s1764_s24 }
  0x63   :  { %v129_v20 = vrot.slane %v120_v11, %v128_v12  ;;  %s2285_s25 = scalar_lea.vmem %s1765_s24, 128  ;;  %p2290_p5 = scmp.lt.s32.totalorder %s1765_s24, %s1765_s24 }
  0x64   :  { %p2286_p4 = scmp.ne.s32.totalorder %s1765_s24, %s2285_s25  ;;  %p2291_p6 = scmp.lt.s32.totalorder %s2285_s25, %s2285_s25 }
  0x65   :  { %339 = vmatpush1.bf16.msra.mxu0 %v1965_v27  ;;  %412 = vmatpush1.bf16.msra.mxu1 %v1966_v28 }
  0x66   :  { %340 = vmatprep.subr.bf16.mxu0 %v1967_v29  ;;  %413 = vmatprep.subr.bf16.mxu1 %v1969_v30  ;;  %p2292_p7 = por %p2291_p6, %p2290_p5 }
  0x68   :  { %p2293_p8 = pnand %p2292_p7, %p2286_p4 }
  0x69   :  { %341 = vmatpush1.bf16.msra.mxu0 %v1971_v31  ;;  %414 = vmatpush1.bf16.msra.mxu1 %v1972_v32 }
  0x6a   :  { %703 = vmatprep.subr.bf16.mxu0 %v2431_v33  ;;  %744 = vmatprep.subr.bf16.mxu1 %v2433_v34 }
  0x6c   :  { %359 = vmatmul.mubr.bf16.vlgmr.msra.gmra.mrb[0].mxu0 %v1973_v35  ;;  %432 = vmatmul.mubr.bf16.vlgmr.msra.gmra.mrb[0].mxu1 %v1973_v35 }
  0x6d   :  { %704 = vmatpush1.bf16.msra.mxu0 %v2435_v36  ;;  %745 = vmatpush1.bf16.msra.mxu1 %v2437_v37 }
  0x6e   :  { %705 = vmatprep.subr.bf16.mxu0 %v2441_v38  ;;  %746 = vmatprep.subr.bf16.mxu1 %v2443_v39 }
  0x6f   :  { %368 = vmatprep.mubr.bf16.mxu0 %v2972_v0  ;;  %441 = vmatprep.mubr.bf16.mxu1 %v2972_v0 }
  0x71   :  { %706 = vmatpush1.bf16.msra.mxu0 %v2445_v40  ;;  %747 = vmatpush1.bf16.msra.mxu1 %v2449_v41 }
  0x72   :  { %707 = vmatprep.subr.bf16.mxu0 %v2453_v42  ;;  %748 = vmatprep.subr.bf16.mxu1 %v2455_v43 }
  0x74   :  { %369 = vmatmul.mubr.bf16.gmra.mrb[4].mxu0 %v1986_v44  ;;  %442 = vmatmul.mubr.bf16.gmra.mrb[4].mxu1 %v1986_v44 }
  0x75   :  { %708 = vmatpush1.bf16.msra.mxu0 %v2459_v45  ;;  %749 = vmatpush1.bf16.msra.mxu1 %v2461_v46 }
  0x76   :  { %709 = vmatprep.subr.bf16.mxu0 %v2465_v47  ;;  %750 = vmatprep.subr.bf16.mxu1 %v2469_v48 }
  0x77   :  { %378 = vmatprep.mubr.bf16.mxu0 %v2972_v0  ;;  %451 = vmatprep.mubr.bf16.mxu1 %v2972_v0 }
  0x79   :  { %710 = vmatpush1.bf16.msra.mxu0 %v2471_v49  ;;  %751 = vmatpush1.bf16.msra.mxu1 %v2473_v50 }
  0x7a   :  { %711 = vmatprep.subr.bf16.mxu0 %v2477_v51  ;;  %752 = vmatprep.subr.bf16.mxu1 %v2481_v52 }
  0x7c   :  { %379 = vmatmul.mubr.bf16.gmra.mrb[8].mxu0 %v1999_v53  ;;  %452 = vmatmul.mubr.bf16.gmra.mrb[8].mxu1 %v1999_v53 }
  0x7d   :  { %712 = vmatpush1.bf16.msra.mxu0 %v2485_v54  ;;  %753 = vmatpush1.bf16.msra.mxu1 %v2487_v55 }
  0x7e   :  { %713 = vmatprep.subr.bf16.mxu0 %v2489_v56  ;;  %754 = vmatprep.subr.bf16.mxu1 %v2491_v57 }
  0x7f   :  { %388 = vmatprep.mubr.bf16.mxu0 %v2972_v0  ;;  %461 = vmatprep.mubr.bf16.mxu1 %v2972_v0 }
  0x81   :  { %714 = vmatpush1.bf16.msra.mxu0 %v2499_v58  ;;  %755 = vmatpush1.bf16.msra.mxu1 %v2501_v59 }
  0x82   :  { %715 = vmatprep.subr.bf16.mxu0 %v2505_v60  ;;  %756 = vmatprep.subr.bf16.mxu1 %v2507_v61 }
  0x84   :  { %389 = vmatmul.mubr.bf16.gmra.mrb[12].mxu0 %v2012_v62  ;;  %462 = vmatmul.mubr.bf16.gmra.mrb[12].mxu1 %v2012_v62 }
  0x85   :  { %716 = vmatpush1.bf16.msra.mxu0 %v2513_v63  ;;  %757 = vmatpush1.bf16.msra.mxu1 %v2515_v1 }
  0x86   :  { %717 = vmatprep.subr.bf16.mxu0 %v2519_v2  ;;  %758 = vmatprep.subr.bf16.mxu1 %v2521_v3 }
  0x87   :  { %735 = vmatprep.mubr.bf16.mxu0 %v2972_v0  ;;  %776 = vmatprep.mubr.bf16.mxu1 %v2972_v0 }
  0x89   :  { %718 = vmatpush1.bf16.msra.mxu0 %v2525_v4  ;;  %759 = vmatpush1.bf16.msra.mxu1 %v2527_v5 }
  0x8a   :  { %821 = vmatprep.subr.bf16.mxu0 %v2431_v33  ;;  %862 = vmatprep.subr.bf16.mxu1 %v2433_v34 }
  0x8c   :  { %736 = vmatmul.mubr.bf16.vlgmr.msra.gmra.mrb[16].mxu0 %v2972_v0  ;;  %777 = vmatmul.mubr.bf16.vlgmr.msra.gmra.mrb[16].mxu1 %v2972_v0 }
  0x8d   :  { %822 = vmatpush1.bf16.msra.mxu0 %v2435_v36  ;;  %863 = vmatpush1.bf16.msra.mxu1 %v2437_v37 }
  0x8e   :  { %823 = vmatprep.subr.bf16.mxu0 %v2441_v38  ;;  %864 = vmatprep.subr.bf16.mxu1 %v2443_v39 }
  0x8f   :  { %853 = vmatprep.mubr.bf16.mxu0 %v2972_v0  ;;  %894 = vmatprep.mubr.bf16.mxu1 %v2972_v0 }
  0x91   :  { %824 = vmatpush1.bf16.msra.mxu0 %v2445_v40  ;;  %865 = vmatpush1.bf16.msra.mxu1 %v2449_v41 }
  0x92   :  { %825 = vmatprep.subr.bf16.mxu0 %v2453_v42  ;;  %866 = vmatprep.subr.bf16.mxu1 %v2455_v43 }
  0x95   :  { %826 = vmatpush1.bf16.msra.mxu0 %v2459_v45  ;;  %867 = vmatpush1.bf16.msra.mxu1 %v2461_v46 }
  0x96   :  { %827 = vmatprep.subr.bf16.mxu0 %v2465_v47  ;;  %868 = vmatprep.subr.bf16.mxu1 %v2469_v48 }
  0x99   :  { %828 = vmatpush1.bf16.msra.mxu0 %v2471_v49  ;;  %869 = vmatpush1.bf16.msra.mxu1 %v2473_v50 }
  0x9a   :  { %829 = vmatprep.subr.bf16.mxu0 %v2477_v51  ;;  %870 = vmatprep.subr.bf16.mxu1 %v2481_v52 }
  0x9d   :  { %830 = vmatpush1.bf16.msra.mxu0 %v2485_v54  ;;  %871 = vmatpush1.bf16.msra.mxu1 %v2487_v55 }
  0x9e   :  { %831 = vmatprep.subr.bf16.mxu0 %v2489_v56  ;;  %872 = vmatprep.subr.bf16.mxu1 %v2491_v57 }
  0xa1   :  { %832 = vmatpush1.bf16.msra.mxu0 %v2499_v58  ;;  %873 = vmatpush1.bf16.msra.mxu1 %v2501_v59 }
  0xa2   :  { %833 = vmatprep.subr.bf16.mxu0 %v2505_v60  ;;  %874 = vmatprep.subr.bf16.mxu1 %v2507_v61 }
  0xa5   :  { %834 = vmatpush1.bf16.msra.mxu0 %v2513_v63  ;;  %875 = vmatpush1.bf16.msra.mxu1 %v2515_v1 }
  0xa6   :  { %835 = vmatprep.subr.bf16.mxu0 %v2519_v2  ;;  %876 = vmatprep.subr.bf16.mxu1 %v2521_v3 }
  0xa9   :  { %836 = vmatpush1.bf16.msra.mxu0 %v2525_v4  ;;  %877 = vmatpush1.bf16.msra.mxu1 %v2527_v5 }
  0xaa   :  { %939 = vmatprep.subr.bf16.mxu0 %v2431_v33  ;;  %980 = vmatprep.subr.bf16.mxu1 %v2433_v34 }
 0x13f   :  { %v2578_v14 = vpop.f32.mrb[0].mxu0  ;;  %v2580_v15 = vpop.f32.mrb[0].mxu1 }
 0x140   :  { %v362_v18 = vpop.f32.mrb[1].mxu0  ;;  %v435_v19 = vpop.f32.mrb[1].mxu1 }
 0x141   :  { %v364_v21 = vpop.f32.mrb[2].mxu0  ;;  %v437_v22 = vpop.f32.mrb[2].mxu1 }
 0x142   :  { %v2584_v23 = vadd.f32 %v364_v21, %v125_v17  ;;  %v366_v24 = vpop.f32.mrb[3].mxu0  ;;  %v2587_v25 = vadd.f32 %v437_v22, %v2576_v13  ;;  %v439_v26 = vpop.f32.mrb[3].mxu1 }
 0x143   :  { %v2589_v27 = vadd.f32 %v366_v24, %v129_v20  ;;  %v2592_v28 = vadd.f32 %v439_v26, %v2582_v16 }
 0x147   :  { %v370_v29 = vpop.f32.mrb[4].mxu0  ;;  %v443_v30 = vpop.f32.mrb[4].mxu1 }
 0x148   :  { %v2594_v31 = vadd.f32 %v370_v29, %v125_v17  ;;  %v372_v32 = vpop.f32.mrb[5].mxu0  ;;  %v2597_v35 = vadd.f32 %v443_v30, %v2576_v13  ;;  %v445_v44 = vpop.f32.mrb[5].mxu1 }
 0x149   :  { %v2599_v53 = vadd.f32 %v372_v32, %v129_v20  ;;  %v374_v62 = vpop.f32.mrb[6].mxu0  ;;  %v2602_v6 = vadd.f32 %v445_v44, %v2582_v16  ;;  %v447_v7 = vpop.f32.mrb[6].mxu1 }
 0x14a   :  { %v2604_v8 = vadd.f32 %v374_v62, %v125_v17  ;;  %v376_v9 = vpop.f32.mrb[7].mxu0  ;;  %v2607_v10 = vadd.f32 %v447_v7, %v2576_v13  ;;  %v449_v11 = vpop.f32.mrb[7].mxu1 }
 0x14b   :  { %2974 = vst [vmem:[#allocation16_spill] sm:$0xff] %v2602_v6  ;;  %v2609_v12 = vadd.f32 %v376_v9, %v129_v20  ;;  %v2612_v21 = vadd.f32 %v449_v11, %v2582_v16 }
 0x14c   :  { %2975 = vst [vmem:[#allocation17_spill] sm:$0xff] %v2604_v8  ;;  %2976 = vst [vmem:[#allocation18_spill] sm:$0xff] %v2607_v10 }
 0x14d   :  { %2977 = vst [vmem:[#allocation19_spill] sm:$0xff] %v2609_v12  ;;  %2978 = vst [vmem:[#allocation20_spill] sm:$0xff] %v2612_v21 }
 0x14f   :  { %v380_v22 = vpop.f32.mrb[8].mxu0  ;;  %v453_v24 = vpop.f32.mrb[8].mxu1 }
 0x150   :  { %v2614_v26 = vadd.f32 %v380_v22, %v125_v17  ;;  %v382_v29 = vpop.f32.mrb[9].mxu0  ;;  %v2617_v30 = vadd.f32 %v453_v24, %v2576_v13  ;;  %v455_v32 = vpop.f32.mrb[9].mxu1 }
 0x151   :  { %v2619_v44 = vadd.f32 %v382_v29, %v129_v20  ;;  %v384_v62 = vpop.f32.mrb[10].mxu0  ;;  %v2622_v7 = vadd.f32 %v455_v32, %v2582_v16  ;;  %v457_v9 = vpop.f32.mrb[10].mxu1 }
 0x152   :  { %2979 = vst [vmem:[#allocation21_spill] sm:$0xff] %v2614_v26  ;;  %2980 = vst [vmem:[#allocation22_spill] sm:$0xff] %v2617_v30  ;;  %v2624_v0 = vadd.f32 %v384_v62, %v125_v17  ;;  %v386_v11 = vpop.f32.mrb[11].mxu0  ;;  %v2627_v21 = vadd.f32 %v457_v9, %v2576_v13  ;;  %v459_v22 = vpop.f32.mrb[11].mxu1 }
 0x153   :  { %2981 = vst [vmem:[#allocation23_spill] sm:$0xff] %v2619_v44  ;;  %2982 = vst [vmem:[#allocation24_spill] sm:$0xff] %v2622_v7  ;;  %v2629_v26 = vadd.f32 %v386_v11, %v129_v20  ;;  %v2632_v24 = vadd.f32 %v459_v22, %v2582_v16 }
 0x154   :  { %2983 = vst [vmem:[#allocation25_spill] sm:$0xff] %v2624_v0  ;;  %2984 = vst [vmem:[#allocation26_spill] sm:$0xff] %v2627_v21 }
 0x155   :  { %2985 = vst [vmem:[#allocation27_spill] sm:$0xff] %v2629_v26  ;;  %2986 = vst [vmem:[#allocation28_spill] sm:$0xff] %v2632_v24 }
 0x157   :  { %v390_v30 = vpop.f32.mrb[12].mxu0  ;;  %v463_v29 = vpop.f32.mrb[12].mxu1 }
 0x158   :  { %v2634_v44 = vadd.f32 %v390_v30, %v125_v17  ;;  %v392_v12 = vpop.f32.mrb[13].mxu0  ;;  %v2637_v32 = vadd.f32 %v463_v29, %v2576_v13  ;;  %v465_v62 = vpop.f32.mrb[13].mxu1 }
 0x159   :  { %v2639_v0 = vadd.f32 %v392_v12, %v129_v20  ;;  %v394_v7 = vpop.f32.mrb[14].mxu0  ;;  %v2642_v9 = vadd.f32 %v465_v62, %v2582_v16  ;;  %v467_v11 = vpop.f32.mrb[14].mxu1  ;;  %v361_v12 = vadd.f32 %v2578_v14, %v125_v17  ;;  %v363_v62 = vadd.f32 %v362_v18, %v129_v20 }
 0x15a   :  { %2987 = vst [vmem:[#allocation29_spill] sm:$0xff] %v2634_v44  ;;  %2988 = vst [vmem:[#allocation30_spill] sm:$0xff] %v2637_v32  ;;  %v2644_v26 = vadd.f32 %v394_v7, %v125_v17  ;;  %v396_v22 = vpop.f32.mrb[15].mxu0  ;;  %v2647_v24 = vadd.f32 %v467_v11, %v2576_v13  ;;  %v469_v30 = vpop.f32.mrb[15].mxu1 }
 0x15b   :  { %2989 = vst [vmem:[#allocation31_spill] sm:$0xff] %v2639_v0  ;;  %2990 = vst [vmem:[#allocation32_spill] sm:$0xff] %v2642_v9  ;;  %v2649_v44 = vadd.f32 %v396_v22, %v129_v20  ;;  %v2652_v29 = vadd.f32 %v469_v30, %v2582_v16  ;;  %v434_v0 = vadd.f32 %v2580_v15, %v2576_v13 }
 0x15c   :  { %2991 = vst [vmem:[#allocation33_spill] sm:$0xff] %v2644_v26  ;;  %2992 = vst [vmem:[#allocation34_spill] sm:$0xff] %v2647_v24  ;;  %v436_v9 = vadd.f32 %v435_v19, %v2582_v16 }
 0x15d   :  { %2993 = vst [vmem:[#allocation35_spill] sm:$0xff] %v2649_v44  ;;  %2994 = vst [vmem:[#allocation36_spill] sm:$0xff] %v2652_v29 }
 0x15f   :  { %v737_v7 = vpop.f32.mrb[16].mxu0  ;;  %v778_v26 = vpop.f32.mrb[16].mxu1 }
 0x160   :  { %v785_v32 = vadd.f32 %v737_v7, %v361_v12  ;;  %v787_v21 = vadd.f32 %v778_v26, %v434_v0  ;;  %v739_v11 = vpop.f32.mrb[17].mxu0  ;;  %v780_v24 = vpop.f32.mrb[17].mxu1 }
 0x161   :  { %v786_v10 = vadd.f32 %v739_v11, %v363_v62  ;;  %v788_v22 = vadd.f32 %v780_v24, %v436_v9  ;;  %v741_v44 = vpop.f32.mrb[18].mxu0  ;;  %v782_v8 = vpop.f32.mrb[18].mxu1 }
 0x162   :  { %v1850_v30 = vmul.f32 -1.442695, %v785_v32  ;;  %v742_v29 = vpop.f32.mrb[19].mxu0  ;;  %v783_v6 = vpop.f32.mrb[19].mxu1 }
 0x163   :  { %v1851_v14 = vmul.f32 -1.442695, %v786_v10  ;;  %v1852_v13 = vmul.f32 -1.442695, %v788_v22 }
 0x164   :  { %2033 = vpow2.f32 %v1850_v30 }
 0x165   :  { %2035 = vpow2.f32 %v1851_v14 }
 0x166   :  { %2037 = vpow2.f32 %v1852_v13 }
 0x167   :  { %2039 = vtanh.f32 %v787_v21  ;;  %v2995_v21 = vmov 0  }
 0x16e   :  { %v2034_v15 = vpop.eup %2033 }
 0x16f   :  { %v2036_v17 = vpop.eup %2035  ;;  %v792_v16 = vadd.f32 1.0, %v2034_v15 }
 0x170   :  { %v798_v18 = vadd.f32 1.0, %v2036_v17  ;;  %v2038_v0 = vpop.eup %2037 }
 0x171   :  { %2041 = vrcp.f32 %v792_v16  ;;  %v2040_v19 = vpop.eup %2039  ;;  %v805_v44 = vadd.f32 1.0, %v2038_v0 }
 0x172   :  { %2043 = vrcp.f32 %v798_v18 }
 0x173   :  { %2045 = vrcp.f32 %v805_v44 }
 0x17b   :  { %v2042_v20 = vpop.eup %2041 }
 0x17c   :  { %v2044_v26 = vpop.eup %2043  ;;  %v809_v8 = vmul.f32 %v2042_v20, %v2040_v19 }
 0x17d   :  { %v808_v24 = vmul.f32 0.0, %v2044_v26  ;;  %v2046_v10 = vpop.eup %2045 }
 0x17f   :  { %v2658_v6 = vadd.f32 %v809_v8, %v808_v24 }
 0x181   :  { %2047 = vtanh.f32 %v2658_v6 }
 0x18b   :  { %v2048_v32 = vpop.eup %2047 }
 0x18c   :  { %v812_v9 = vmul.f32 %v2048_v32, %v2046_v10 }
 0x18e   :  { %v820_v29 = vpack.c.bf16 %v812_v9, %v812_v9 }
 0x190   :  { %854 = vmatmul.mubr.bf16.vlgmr.msra.gmra.mrb[20].mxu0 %v820_v29  ;;  %895 = vmatmul.mubr.bf16.vlgmr.msra.gmra.mrb[20].mxu1 %v820_v29 }
 0x191   :  { %940 = vmatpush1.bf16.msra.mxu0 %v2435_v36  ;;  %981 = vmatpush1.bf16.msra.mxu1 %v2437_v37 }
 0x192   :  { %941 = vmatprep.subr.bf16.mxu0 %v2441_v38  ;;  %982 = vmatprep.subr.bf16.mxu1 %v2443_v39 }
 0x193   :  { %971 = vmatprep.mubr.bf16.mxu0 %v2995_v21  ;;  %1012 = vmatprep.mubr.bf16.mxu1 %v2995_v21 }
 0x195   :  { %942 = vmatpush1.bf16.msra.mxu0 %v2445_v40  ;;  %983 = vmatpush1.bf16.msra.mxu1 %v2449_v41 }
 0x196   :  { %943 = vmatprep.subr.bf16.mxu0 %v2453_v42  ;;  %984 = vmatprep.subr.bf16.mxu1 %v2455_v43 }
 0x199   :  { %944 = vmatpush1.bf16.msra.mxu0 %v2459_v45  ;;  %985 = vmatpush1.bf16.msra.mxu1 %v2461_v46 }
 0x19a   :  { %945 = vmatprep.subr.bf16.mxu0 %v2465_v47  ;;  %986 = vmatprep.subr.bf16.mxu1 %v2469_v48 }
 0x19d   :  { %946 = vmatpush1.bf16.msra.mxu0 %v2471_v49  ;;  %987 = vmatpush1.bf16.msra.mxu1 %v2473_v50 }
 0x19e   :  { %947 = vmatprep.subr.bf16.mxu0 %v2477_v51  ;;  %988 = vmatprep.subr.bf16.mxu1 %v2481_v52 }
 0x1a1   :  { %948 = vmatpush1.bf16.msra.mxu0 %v2485_v54  ;;  %989 = vmatpush1.bf16.msra.mxu1 %v2487_v55 }
 0x1a2   :  { %949 = vmatprep.subr.bf16.mxu0 %v2489_v56  ;;  %990 = vmatprep.subr.bf16.mxu1 %v2491_v57 }
 0x1a5   :  { %950 = vmatpush1.bf16.msra.mxu0 %v2499_v58  ;;  %991 = vmatpush1.bf16.msra.mxu1 %v2501_v59 }
 0x1a6   :  { %951 = vmatprep.subr.bf16.mxu0 %v2505_v60  ;;  %992 = vmatprep.subr.bf16.mxu1 %v2507_v61 }
 0x1a9   :  { %952 = vmatpush1.bf16.msra.mxu0 %v2513_v63  ;;  %993 = vmatpush1.bf16.msra.mxu1 %v2515_v1 }
 0x1aa   :  { %953 = vmatprep.subr.bf16.mxu0 %v2519_v2  ;;  %994 = vmatprep.subr.bf16.mxu1 %v2521_v3 }
 0x1ad   :  { %954 = vmatpush1.bf16.msra.mxu0 %v2525_v4  ;;  %995 = vmatpush1.bf16.msra.mxu1 %v2527_v5 }
 0x1ae   :  { %1057 = vmatprep.subr.bf16.mxu0 %v2431_v33  ;;  %1098 = vmatprep.subr.bf16.mxu1 %v2433_v34 }
 0x263   :  { %v855_v12 = vpop.f32.mrb[20].mxu0  ;;  %v896_v62 = vpop.f32.mrb[20].mxu1 }
 0x264   :  { %v903_v7 = vadd.f32 %v855_v12, %v2584_v23  ;;  %v905_v11 = vadd.f32 %v896_v62, %v2587_v25  ;;  %v857_v22 = vpop.f32.mrb[21].mxu0  ;;  %v898_v30 = vpop.f32.mrb[21].mxu1 }
 0x265   :  { %v904_v14 = vadd.f32 %v857_v22, %v2589_v27  ;;  %v906_v13 = vadd.f32 %v898_v30, %v2592_v28  ;;  %v859_v15 = vpop.f32.mrb[22].mxu0  ;;  %v900_v17 = vpop.f32.mrb[22].mxu1 }
 0x266   :  { %v1853_v16 = vmul.f32 -1.442695, %v903_v7  ;;  %v860_v18 = vpop.f32.mrb[23].mxu0  ;;  %v901_v0 = vpop.f32.mrb[23].mxu1 }
 0x267   :  { %v1854_v19 = vmul.f32 -1.442695, %v904_v14  ;;  %v1855_v20 = vmul.f32 -1.442695, %v906_v13 }
 0x268   :  { %2049 = vpow2.f32 %v1853_v16  ;;  %v2996_v16 = vld [vmem:[#allocation16_spill] sm:$0xff] }
 0x269   :  { %2051 = vpow2.f32 %v1854_v19 }
 0x26a   :  { %2053 = vpow2.f32 %v1855_v20 }
 0x26b   :  { %2055 = vtanh.f32 %v905_v11 }
 0x272   :  { %v2050_v26 = vpop.eup %2049 }
 0x273   :  { %v2052_v8 = vpop.eup %2051  ;;  %v910_v23 = vadd.f32 1.0, %v2050_v26 }
 0x274   :  { %v916_v25 = vadd.f32 1.0, %v2052_v8  ;;  %v2054_v27 = vpop.eup %2053 }
 0x275   :  { %2057 = vrcp.f32 %v910_v23  ;;  %v2056_v44 = vpop.eup %2055  ;;  %v923_v32 = vadd.f32 1.0, %v2054_v27 }
 0x276   :  { %2059 = vrcp.f32 %v916_v25 }
 0x277   :  { %2061 = vrcp.f32 %v923_v32 }
 0x27f   :  { %v2058_v28 = vpop.eup %2057 }
 0x280   :  { %v2060_v24 = vpop.eup %2059  ;;  %v927_v10 = vmul.f32 %v2058_v28, %v2056_v44 }
 0x281   :  { %v926_v9 = vmul.f32 %v2060_v24, %v2658_v6  ;;  %v2062_v12 = vpop.eup %2061 }
 0x283   :  { %v2700_v29 = vadd.f32 %v927_v10, %v926_v9 }
 0x285   :  { %2063 = vtanh.f32 %v2700_v29 }
 0x28f   :  { %v2064_v62 = vpop.eup %2063 }
 0x290   :  { %v930_v7 = vmul.f32 %v2064_v62, %v2062_v12 }
 0x292   :  { %v938_v11 = vpack.c.bf16 %v930_v7, %v930_v7 }
 0x294   :  { %972 = vmatmul.mubr.bf16.vlgmr.msra.gmra.mrb[24].mxu0 %v938_v11  ;;  %1013 = vmatmul.mubr.bf16.vlgmr.msra.gmra.mrb[24].mxu1 %v938_v11 }
 0x295   :  { %1058 = vmatpush1.bf16.msra.mxu0 %v2435_v36  ;;  %1099 = vmatpush1.bf16.msra.mxu1 %v2437_v37 }
 0x296   :  { %1059 = vmatprep.subr.bf16.mxu0 %v2441_v38  ;;  %1100 = vmatprep.subr.bf16.mxu1 %v2443_v39 }
 0x297   :  { %1089 = vmatprep.mubr.bf16.mxu0 %v2995_v21  ;;  %1130 = vmatprep.mubr.bf16.mxu1 %v2995_v21 }
 0x299   :  { %1060 = vmatpush1.bf16.msra.mxu0 %v2445_v40  ;;  %1101 = vmatpush1.bf16.msra.mxu1 %v2449_v41 }
 0x29a   :  { %1061 = vmatprep.subr.bf16.mxu0 %v2453_v42  ;;  %1102 = vmatprep.subr.bf16.mxu1 %v2455_v43 }
 0x29d   :  { %1062 = vmatpush1.bf16.msra.mxu0 %v2459_v45  ;;  %1103 = vmatpush1.bf16.msra.mxu1 %v2461_v46 }
 0x29e   :  { %1063 = vmatprep.subr.bf16.mxu0 %v2465_v47  ;;  %1104 = vmatprep.subr.bf16.mxu1 %v2469_v48 }
 0x2a1   :  { %1064 = vmatpush1.bf16.msra.mxu0 %v2471_v49  ;;  %1105 = vmatpush1.bf16.msra.mxu1 %v2473_v50 }
 0x2a2   :  { %1065 = vmatprep.subr.bf16.mxu0 %v2477_v51  ;;  %1106 = vmatprep.subr.bf16.mxu1 %v2481_v52 }
 0x2a5   :  { %1066 = vmatpush1.bf16.msra.mxu0 %v2485_v54  ;;  %1107 = vmatpush1.bf16.msra.mxu1 %v2487_v55 }
 0x2a6   :  { %1067 = vmatprep.subr.bf16.mxu0 %v2489_v56  ;;  %1108 = vmatprep.subr.bf16.mxu1 %v2491_v57 }
 0x2a9   :  { %1068 = vmatpush1.bf16.msra.mxu0 %v2499_v58  ;;  %1109 = vmatpush1.bf16.msra.mxu1 %v2501_v59 }
 0x2aa   :  { %1069 = vmatprep.subr.bf16.mxu0 %v2505_v60  ;;  %1110 = vmatprep.subr.bf16.mxu1 %v2507_v61 }
 0x2ad   :  { %1070 = vmatpush1.bf16.msra.mxu0 %v2513_v63  ;;  %1111 = vmatpush1.bf16.msra.mxu1 %v2515_v1 }
 0x2ae   :  { %1071 = vmatprep.subr.bf16.mxu0 %v2519_v2  ;;  %1112 = vmatprep.subr.bf16.mxu1 %v2521_v3 }
 0x2b1   :  { %1072 = vmatpush1.bf16.msra.mxu0 %v2525_v4  ;;  %1113 = vmatpush1.bf16.msra.mxu1 %v2527_v5 }
 0x2b2   :  { %1175 = vmatprep.subr.bf16.mxu0 %v2431_v33  ;;  %1216 = vmatprep.subr.bf16.mxu1 %v2433_v34 }
 0x367   :  { %v973_v6 = vpop.f32.mrb[24].mxu0  ;;  %v1014_v22 = vpop.f32.mrb[24].mxu1 }
 0x368   :  { %v1021_v30 = vadd.f32 %v973_v6, %v2594_v31  ;;  %v1023_v14 = vadd.f32 %v1014_v22, %v2597_v35  ;;  %v975_v13 = vpop.f32.mrb[25].mxu0  ;;  %v1016_v15 = vpop.f32.mrb[25].mxu1 }
 0x369   :  { %v1022_v17 = vadd.f32 %v975_v13, %v2599_v53  ;;  %v1024_v18 = vadd.f32 %v1016_v15, %v2996_v16  ;;  %v977_v0 = vpop.f32.mrb[26].mxu0  ;;  %v1018_v19 = vpop.f32.mrb[26].mxu1  ;;  %v2998_v15 = vld [vmem:[#allocation18_spill] sm:$0xff] }
 0x36a   :  { %v1856_v20 = vmul.f32 -1.442695, %v1021_v30  ;;  %v978_v26 = vpop.f32.mrb[27].mxu0  ;;  %v1019_v8 = vpop.f32.mrb[27].mxu1  ;;  %v2999_v0 = vld [vmem:[#allocation19_spill] sm:$0xff] }
 0x36b   :  { %v1857_v23 = vmul.f32 -1.442695, %v1022_v17  ;;  %v1858_v25 = vmul.f32 -1.442695, %v1024_v18 }
 0x36c   :  { %2065 = vpow2.f32 %v1856_v20  ;;  %v3000_v20 = vld [vmem:[#allocation20_spill] sm:$0xff] }
 0x36d   :  { %2067 = vpow2.f32 %v1857_v23 }
 0x36e   :  { %2069 = vpow2.f32 %v1858_v25 }
 0x36f   :  { %2071 = vtanh.f32 %v1023_v14  ;;  %v2997_v14 = vld [vmem:[#allocation17_spill] sm:$0xff] }
 0x376   :  { %v2066_v27 = vpop.eup %2065 }
 0x377   :  { %v2068_v44 = vpop.eup %2067  ;;  %v1028_v31 = vadd.f32 1.0, %v2066_v27 }
 0x378   :  { %v1034_v35 = vadd.f32 1.0, %v2068_v44  ;;  %v2070_v53 = vpop.eup %2069 }
 0x379   :  { %2073 = vrcp.f32 %v1028_v31  ;;  %v2072_v28 = vpop.eup %2071  ;;  %v1041_v9 = vadd.f32 1.0, %v2070_v53 }
 0x37a   :  { %2075 = vrcp.f32 %v1034_v35 }
 0x37b   :  { %2077 = vrcp.f32 %v1041_v9 }
 0x383   :  { %v2074_v24 = vpop.eup %2073 }
 0x384   :  { %v2076_v10 = vpop.eup %2075  ;;  %v1045_v32 = vmul.f32 %v2074_v24, %v2072_v28 }
 0x385   :  { %v1044_v12 = vmul.f32 %v2076_v10, %v2700_v29  ;;  %v2078_v7 = vpop.eup %2077 }
 0x387   :  { %v2742_v62 = vadd.f32 %v1045_v32, %v1044_v12 }
 0x389   :  { %2079 = vtanh.f32 %v2742_v62 }
 0x393   :  { %v2080_v11 = vpop.eup %2079 }
 0x394   :  { %v1048_v6 = vmul.f32 %v2080_v11, %v2078_v7 }
 0x396   :  { %v1056_v22 = vpack.c.bf16 %v1048_v6, %v1048_v6 }
 0x398   :  { %1090 = vmatmul.mubr.bf16.vlgmr.msra.gmra.mrb[28].mxu0 %v1056_v22  ;;  %1131 = vmatmul.mubr.bf16.vlgmr.msra.gmra.mrb[28].mxu1 %v1056_v22 }
 0x399   :  { %1176 = vmatpush1.bf16.msra.mxu0 %v2435_v36  ;;  %1217 = vmatpush1.bf16.msra.mxu1 %v2437_v37 }
 0x39a   :  { %1177 = vmatprep.subr.bf16.mxu0 %v2441_v38  ;;  %1218 = vmatprep.subr.bf16.mxu1 %v2443_v39 }
 0x39b   :  { %1207 = vmatprep.mubr.bf16.mxu0 %v2995_v21  ;;  %1248 = vmatprep.mubr.bf16.mxu1 %v2995_v21 }
 0x39d   :  { %1178 = vmatpush1.bf16.msra.mxu0 %v2445_v40  ;;  %1219 = vmatpush1.bf16.msra.mxu1 %v2449_v41 }
 0x39e   :  { %1179 = vmatprep.subr.bf16.mxu0 %v2453_v42  ;;  %1220 = vmatprep.subr.bf16.mxu1 %v2455_v43 }
 0x3a1   :  { %1180 = vmatpush1.bf16.msra.mxu0 %v2459_v45  ;;  %1221 = vmatpush1.bf16.msra.mxu1 %v2461_v46 }
 0x3a2   :  { %1181 = vmatprep.subr.bf16.mxu0 %v2465_v47  ;;  %1222 = vmatprep.subr.bf16.mxu1 %v2469_v48 }
 0x3a5   :  { %1182 = vmatpush1.bf16.msra.mxu0 %v2471_v49  ;;  %1223 = vmatpush1.bf16.msra.mxu1 %v2473_v50 }
 0x3a6   :  { %1183 = vmatprep.subr.bf16.mxu0 %v2477_v51  ;;  %1224 = vmatprep.subr.bf16.mxu1 %v2481_v52 }
 0x3a9   :  { %1184 = vmatpush1.bf16.msra.mxu0 %v2485_v54  ;;  %1225 = vmatpush1.bf16.msra.mxu1 %v2487_v55 }
 0x3aa   :  { %1185 = vmatprep.subr.bf16.mxu0 %v2489_v56  ;;  %1226 = vmatprep.subr.bf16.mxu1 %v2491_v57 }
 0x3ad   :  { %1186 = vmatpush1.bf16.msra.mxu0 %v2499_v58  ;;  %1227 = vmatpush1.bf16.msra.mxu1 %v2501_v59 }
 0x3ae   :  { %1187 = vmatprep.subr.bf16.mxu0 %v2505_v60  ;;  %1228 = vmatprep.subr.bf16.mxu1 %v2507_v61 }
 0x3b1   :  { %1188 = vmatpush1.bf16.msra.mxu0 %v2513_v63  ;;  %1229 = vmatpush1.bf16.msra.mxu1 %v2515_v1 }
 0x3b2   :  { %1189 = vmatprep.subr.bf16.mxu0 %v2519_v2  ;;  %1230 = vmatprep.subr.bf16.mxu1 %v2521_v3 }
 0x3b5   :  { %1190 = vmatpush1.bf16.msra.mxu0 %v2525_v4  ;;  %1231 = vmatpush1.bf16.msra.mxu1 %v2527_v5 }
 0x3b6   :  { %1293 = vmatprep.subr.bf16.mxu0 %v2431_v33  ;;  %1334 = vmatprep.subr.bf16.mxu1 %v2433_v34 }
 0x46b   :  { %v1091_v29 = vpop.f32.mrb[28].mxu0  ;;  %v1132_v30 = vpop.f32.mrb[28].mxu1 }
 0x46c   :  { %v1139_v13 = vadd.f32 %v1091_v29, %v2997_v14  ;;  %v1141_v17 = vadd.f32 %v1132_v30, %v2998_v15  ;;  %v1093_v16 = vpop.f32.mrb[29].mxu0  ;;  %v1134_v18 = vpop.f32.mrb[29].mxu1 }
 0x46d   :  { %v1140_v19 = vadd.f32 %v1093_v16, %v2999_v0  ;;  %v1142_v26 = vadd.f32 %v1134_v18, %v3000_v20  ;;  %v1095_v8 = vpop.f32.mrb[30].mxu0  ;;  %v1136_v23 = vpop.f32.mrb[30].mxu1 }
 0x46e   :  { %v1859_v25 = vmul.f32 -1.442695, %v1139_v13  ;;  %v1096_v27 = vpop.f32.mrb[31].mxu0  ;;  %v1137_v44 = vpop.f32.mrb[31].mxu1 }
 0x46f   :  { %v1860_v33 = vmul.f32 -1.442695, %v1140_v19  ;;  %v1861_v34 = vmul.f32 -1.442695, %v1142_v26 }
 0x470   :  { %2081 = vpow2.f32 %v1859_v25 }
 0x471   :  { %2083 = vpow2.f32 %v1860_v33 }
 0x472   :  { %2085 = vpow2.f32 %v1861_v34 }
 0x473   :  { %2087 = vtanh.f32 %v1141_v17 }
 0x47a   :  { %v2082_v31 = vpop.eup %2081 }
 0x47b   :  { %v2084_v35 = vpop.eup %2083  ;;  %v1146_v53 = vadd.f32 1.0, %v2082_v31  ;;  %v2833_v31 = vld [vmem:[#allocation8] ss:$16 sps:$4 sm:$0xff]  }
 0x47c   :  { %v1152_v28 = vadd.f32 1.0, %v2084_v35  ;;  %v2086_v24 = vpop.eup %2085  ;;  %v2836_v35 = vld [vmem:[#allocation8 + $0x8] ss:$16 sps:$4 sm:$0xff]  }
 0x47d   :  { %2089 = vrcp.f32 %v1146_v53  ;;  %v2088_v10 = vpop.eup %2087  ;;  %v1159_v7 = vadd.f32 1.0, %v2086_v24  ;;  %v2839_v53 = vld [vmem:[#allocation8 + $0x24] ss:$16 sps:$4 sm:$0xff]   ;;  %v2847_v24 = vld [vmem:[#allocation8 + $0x20] ss:$16 sps:$4 sm:$0xff]  }
 0x47e   :  { %2091 = vrcp.f32 %v1152_v28  ;;  %v2842_v28 = vld [vmem:[#allocation8 + $0x2c] ss:$16 sps:$4 sm:$0xff]  }
 0x47f   :  { %2093 = vrcp.f32 %v1159_v7  ;;  %v2862_v7 = vld [vmem:[#allocation8 + $0x48] ss:$16 sps:$4 sm:$0xff]  }
 0x487   :  { %v2090_v32 = vpop.eup %2089 }
 0x488   :  { %v2092_v9 = vpop.eup %2091  ;;  %v1163_v12 = vmul.f32 %v2090_v32, %v2088_v10  ;;  %v2850_v10 = vld [vmem:[#allocation8 + $0x28] ss:$16 sps:$4 sm:$0xff]   ;;  %v2853_v32 = vld [vmem:[#allocation8 + $0x44] ss:$16 sps:$4 sm:$0xff]  }
 0x489   :  { %v1162_v11 = vmul.f32 %v2092_v9, %v2742_v62  ;;  %v2094_v22 = vpop.eup %2093  ;;  %v2856_v9 = vld [vmem:[#allocation8 + $0x4c] ss:$16 sps:$4 sm:$0xff]  }
 0x48b   :  { %v2784_v6 = vadd.f32 %v1163_v12, %v1162_v11  ;;  %v2859_v12 = vld [vmem:[#allocation8 + $0x40] ss:$16 sps:$4 sm:$0xff]   ;;  %v2865_v11 = vld [vmem:[#allocation8 + $0x64] ss:$16 sps:$4 sm:$0xff]  }
 0x48d   :  { %2095 = vtanh.f32 %v2784_v6 }
 0x497   :  { %v2096_v29 = vpop.eup %2095 }
 0x498   :  { %v1166_v30 = vmul.f32 %v2096_v29, %v2094_v22  ;;  %v2871_v22 = vld [vmem:[#allocation8 + $0x60] ss:$16 sps:$4 sm:$0xff]   ;;  %v2874_v29 = vld [vmem:[#allocation8 + $0x68] ss:$16 sps:$4 sm:$0xff]  }
 0x49a   :  { %v1174_v14 = vpack.c.bf16 %v1166_v30, %v1166_v30  ;;  %v2877_v30 = vld [vmem:[#allocation8 + $0x84] ss:$16 sps:$4 sm:$0xff]  }
 0x49c   :  { %1208 = vmatmul.mubr.bf16.vlgmr.msra.gmra.mrb[32].mxu0 %v1174_v14  ;;  %1249 = vmatmul.mubr.bf16.vlgmr.msra.gmra.mrb[32].mxu1 %v1174_v14  ;;  %v2880_v14 = vld [vmem:[#allocation8 + $0x8c] ss:$16 sps:$4 sm:$0xff]  }
 0x49d   :  { %1294 = vmatpush1.bf16.msra.mxu0 %v2435_v36  ;;  %1335 = vmatpush1.bf16.msra.mxu1 %v2437_v37  ;;  %v2819_v36 = vld [vmem:[#allocation8 + $0x4] ss:$16 sps:$4 sm:$0xff]   ;;  %v2822_v37 = vld [vmem:[#allocation8 + $0xc] ss:$16 sps:$4 sm:$0xff]  }
 0x49e   :  { %1295 = vmatprep.subr.bf16.mxu0 %v2441_v38  ;;  %1336 = vmatprep.subr.bf16.mxu1 %v2443_v39 }
 0x49f   :  { %1325 = vmatprep.mubr.bf16.mxu0 %v2995_v21  ;;  %1366 = vmatprep.mubr.bf16.mxu1 %v2995_v21 }
 0x4a1   :  { %1296 = vmatpush1.bf16.msra.mxu0 %v2445_v40  ;;  %1337 = vmatpush1.bf16.msra.mxu1 %v2449_v41  ;;  %v3001_v40 = vld [vmem:[#allocation21_spill] sm:$0xff] }
 0x4a2   :  { %1297 = vmatprep.subr.bf16.mxu0 %v2453_v42  ;;  %1338 = vmatprep.subr.bf16.mxu1 %v2455_v43  ;;  %v3002_v42 = vld [vmem:[#allocation22_spill] sm:$0xff] }
 0x4a5   :  { %1298 = vmatpush1.bf16.msra.mxu0 %v2459_v45  ;;  %1339 = vmatpush1.bf16.msra.mxu1 %v2461_v46 }
 0x4a6   :  { %1299 = vmatprep.subr.bf16.mxu0 %v2465_v47  ;;  %1340 = vmatprep.subr.bf16.mxu1 %v2469_v48  ;;  %v3003_v47 = vld [vmem:[#allocation23_spill] sm:$0xff] }
 0x4a9   :  { %1300 = vmatpush1.bf16.msra.mxu0 %v2471_v49  ;;  %1341 = vmatpush1.bf16.msra.mxu1 %v2473_v50  ;;  %v3004_v49 = vld [vmem:[#allocation24_spill] sm:$0xff] }
 0x4aa   :  { %1301 = vmatprep.subr.bf16.mxu0 %v2477_v51  ;;  %1342 = vmatprep.subr.bf16.mxu1 %v2481_v52 }
 0x4ad   :  { %1302 = vmatpush1.bf16.msra.mxu0 %v2485_v54  ;;  %1343 = vmatpush1.bf16.msra.mxu1 %v2487_v55 }
 0x4ae   :  { %1303 = vmatprep.subr.bf16.mxu0 %v2489_v56  ;;  %1344 = vmatprep.subr.bf16.mxu1 %v2491_v57 }
 0x4b1   :  { %1304 = vmatpush1.bf16.msra.mxu0 %v2499_v58  ;;  %1345 = vmatpush1.bf16.msra.mxu1 %v2501_v59 }
 0x4b2   :  { %1305 = vmatprep.subr.bf16.mxu0 %v2505_v60  ;;  %1346 = vmatprep.subr.bf16.mxu1 %v2507_v61 }
 0x4b5   :  { %1306 = vmatpush1.bf16.msra.mxu0 %v2513_v63  ;;  %1347 = vmatpush1.bf16.msra.mxu1 %v2515_v1 }
 0x4b6   :  { %1307 = vmatprep.subr.bf16.mxu0 %v2519_v2  ;;  %1348 = vmatprep.subr.bf16.mxu1 %v2521_v3 }
 0x4b9   :  { %1308 = vmatpush1.bf16.msra.mxu0 %v2525_v4  ;;  %1349 = vmatpush1.bf16.msra.mxu1 %v2527_v5 }
 0x4ba   :  { %1411 = vmatprep.subr.bf16.mxu0 %v2819_v36  ;;  %1452 = vmatprep.subr.bf16.mxu1 %v2822_v37 }
 0x56f   :  { %v1209_v38 = vpop.f32.mrb[32].mxu0  ;;  %v1250_v39 = vpop.f32.mrb[32].mxu1 }
 0x570   :  { %v1257_v41 = vadd.f32 %v1209_v38, %v3001_v40  ;;  %v1259_v43 = vadd.f32 %v1250_v39, %v3002_v42  ;;  %v1211_v45 = vpop.f32.mrb[33].mxu0  ;;  %v1252_v46 = vpop.f32.mrb[33].mxu1  ;;  %v2883_v38 = vld [vmem:[#allocation8 + $0x80] ss:$16 sps:$4 sm:$0xff]   ;;  %v2886_v39 = vld [vmem:[#allocation8 + $0x88] ss:$16 sps:$4 sm:$0xff]  }
 0x571   :  { %v1258_v48 = vadd.f32 %v1211_v45, %v3003_v47  ;;  %v1260_v50 = vadd.f32 %v1252_v46, %v3004_v49  ;;  %v1213_v51 = vpop.f32.mrb[34].mxu0  ;;  %v1254_v52 = vpop.f32.mrb[34].mxu1  ;;  %v2889_v40 = vld [vmem:[#allocation8 + $0xa4] ss:$16 sps:$4 sm:$0xff]   ;;  %v3006_v42 = vld [vmem:[#allocation26_spill] sm:$0xff]  ;;  %v3008_v46 = vld [vmem:[#allocation28_spill] sm:$0xff] }
 0x572   :  { %v1862_v54 = vmul.f32 -1.442695, %v1257_v41  ;;  %v1214_v55 = vpop.f32.mrb[35].mxu0  ;;  %v1255_v56 = vpop.f32.mrb[35].mxu1  ;;  %v2892_v41 = vld [vmem:[#allocation8 + $0xac] ss:$16 sps:$4 sm:$0xff]  }
 0x573   :  { %v1863_v57 = vmul.f32 -1.442695, %v1258_v48  ;;  %v1864_v62 = vmul.f32 -1.442695, %v1260_v50  ;;  %v3007_v45 = vld [vmem:[#allocation27_spill] sm:$0xff] }
 0x574   :  { %2097 = vpow2.f32 %v1862_v54 }
 0x575   :  { %2099 = vpow2.f32 %v1863_v57 }
 0x576   :  { %2101 = vpow2.f32 %v1864_v62 }
 0x577   :  { %2103 = vtanh.f32 %v1259_v43 }
 0x57e   :  { %v2098_v13 = vpop.eup %2097 }
 0x57f   :  { %v2100_v15 = vpop.eup %2099  ;;  %v1264_v17 = vadd.f32 1.0, %v2098_v13 }
 0x580   :  { %v1270_v16 = vadd.f32 1.0, %v2100_v15  ;;  %v2102_v18 = vpop.eup %2101 }
 0x581   :  { %2105 = vrcp.f32 %v1264_v17  ;;  %v2104_v0 = vpop.eup %2103  ;;  %v1277_v8 = vadd.f32 1.0, %v2102_v18 }
 0x582   :  { %2107 = vrcp.f32 %v1270_v16 }
 0x583   :  { %2109 = vrcp.f32 %v1277_v8  ;;  %v2189_v8 = vld [vmem:[#allocation8 + $0xc4] ss:$16 sps:$4 sm:$0xff]  }
 0x58b   :  { %v2106_v19 = vpop.eup %2105 }
 0x58c   :  { %v2108_v20 = vpop.eup %2107  ;;  %v1281_v26 = vmul.f32 %v2106_v19, %v2104_v0 }
 0x58d   :  { %v1280_v23 = vmul.f32 %v2108_v20, %v2784_v6  ;;  %v2110_v27 = vpop.eup %2109  ;;  %v2868_v6 = vld [vmem:[#allocation8 + $0x6c] ss:$16 sps:$4 sm:$0xff]  }
 0x58f   :  { %v2830_v25 = vadd.f32 %v1281_v26, %v1280_v23  ;;  %v2188_v26 = vld [vmem:[#allocation8 + $0xa8] ss:$16 sps:$4 sm:$0xff]   ;;  %v2190_v23 = vld [vmem:[#allocation8 + $0xcc] ss:$16 sps:$4 sm:$0xff]  }
 0x591   :  { %2111 = vtanh.f32 %v2830_v25 }
 0x59b   :  { %v2112_v44 = vpop.eup %2111 }
 0x59c   :  { %v1284_v33 = vmul.f32 %v2112_v44, %v2110_v27  ;;  %v2192_v27 = vld [vmem:[#allocation8 + $0xc8] ss:$16 sps:$4 sm:$0xff]   ;;  %v2193_v44 = vld [vmem:[#allocation8 + $0xe4] ss:$16 sps:$4 sm:$0xff]  }
 0x59e   :  { %v1292_v34 = vpack.c.bf16 %v1284_v33, %v1284_v33  ;;  %v2194_v33 = vld [vmem:[#allocation8 + $0xec] ss:$16 sps:$4 sm:$0xff]  }
 0x5a0   :  { %1326 = vmatmul.mubr.bf16.vlgmr.msra.gmra.mrb[36].mxu0 %v1292_v34  ;;  %1367 = vmatmul.mubr.bf16.vlgmr.msra.gmra.mrb[36].mxu1 %v1292_v34  ;;  %v2195_v34 = vld [vmem:[#allocation8 + $0xe0] ss:$16 sps:$4 sm:$0xff]  }
 0x5a1   :  { %1412 = vmatpush1.bf16.msra.mxu0 %v2833_v31  ;;  %1453 = vmatpush1.bf16.msra.mxu1 %v2836_v35 }
 0x5a2   :  { %1413 = vmatprep.subr.bf16.mxu0 %v2839_v53  ;;  %1454 = vmatprep.subr.bf16.mxu1 %v2842_v28 }
 0x5a3   :  { %1443 = vmatprep.mubr.bf16.mxu0 %v2995_v21  ;;  %1484 = vmatprep.mubr.bf16.mxu1 %v2995_v21 }
 0x5a5   :  { %1414 = vmatpush1.bf16.msra.mxu0 %v2847_v24  ;;  %1455 = vmatpush1.bf16.msra.mxu1 %v2850_v10 }
 0x5a6   :  { %1415 = vmatprep.subr.bf16.mxu0 %v2853_v32  ;;  %1456 = vmatprep.subr.bf16.mxu1 %v2856_v9 }
 0x5a9   :  { %1416 = vmatpush1.bf16.msra.mxu0 %v2859_v12  ;;  %1457 = vmatpush1.bf16.msra.mxu1 %v2862_v7 }
 0x5aa   :  { %1417 = vmatprep.subr.bf16.mxu0 %v2865_v11  ;;  %1458 = vmatprep.subr.bf16.mxu1 %v2868_v6 }
 0x5ad   :  { %1418 = vmatpush1.bf16.msra.mxu0 %v2871_v22  ;;  %1459 = vmatpush1.bf16.msra.mxu1 %v2874_v29 }
 0x5ae   :  { %1419 = vmatprep.subr.bf16.mxu0 %v2877_v30  ;;  %1460 = vmatprep.subr.bf16.mxu1 %v2880_v14 }
 0x5b1   :  { %1420 = vmatpush1.bf16.msra.mxu0 %v2883_v38  ;;  %1461 = vmatpush1.bf16.msra.mxu1 %v2886_v39 }
 0x5b2   :  { %1421 = vmatprep.subr.bf16.mxu0 %v2889_v40  ;;  %1462 = vmatprep.subr.bf16.mxu1 %v2892_v41 }
 0x5b5   :  { %1422 = vmatpush1.bf16.msra.mxu0 %v2499_v58  ;;  %1463 = vmatpush1.bf16.msra.mxu1 %v2501_v59 }
 0x5b6   :  { %1423 = vmatprep.subr.bf16.mxu0 %v2505_v60  ;;  %1464 = vmatprep.subr.bf16.mxu1 %v2507_v61  ;;  %v3005_v60 = vld [vmem:[#allocation25_spill] sm:$0xff] }
 0x5b9   :  { %1424 = vmatpush1.bf16.msra.mxu0 %v2513_v63  ;;  %1465 = vmatpush1.bf16.msra.mxu1 %v2515_v1 }
 0x5ba   :  { %1425 = vmatprep.subr.bf16.mxu0 %v2519_v2  ;;  %1466 = vmatprep.subr.bf16.mxu1 %v2521_v3 }
 0x5bd   :  { %1426 = vmatpush1.bf16.msra.mxu0 %v2525_v4  ;;  %1467 = vmatpush1.bf16.msra.mxu1 %v2527_v5 }
 0x5be   :  { %1529 = vmatprep.subr.bf16.mxu0 %v2819_v36  ;;  %1570 = vmatprep.subr.bf16.mxu1 %v2822_v37 }
 0x673   :  { %v1327_v58 = vpop.f32.mrb[36].mxu0  ;;  %v1368_v59 = vpop.f32.mrb[36].mxu1 }
 0x674   :  { %v1375_v61 = vadd.f32 %v1327_v58, %v3005_v60  ;;  %v1377_v63 = vadd.f32 %v1368_v59, %v3006_v42  ;;  %v1329_v43 = vpop.f32.mrb[37].mxu0  ;;  %v1370_v1 = vpop.f32.mrb[37].mxu1 }
 0x675   :  { %v1376_v2 = vadd.f32 %v1329_v43, %v3007_v45  ;;  %v1378_v3 = vadd.f32 %v1370_v1, %v3008_v46  ;;  %v1331_v47 = vpop.f32.mrb[38].mxu0  ;;  %v1372_v4 = vpop.f32.mrb[38].mxu1 }
 0x676   :  { %v1865_v48 = vmul.f32 -1.442695, %v1375_v61  ;;  %v1332_v5 = vpop.f32.mrb[39].mxu0  ;;  %v1373_v49 = vpop.f32.mrb[39].mxu1 }
 0x677   :  { %v1866_v36 = vmul.f32 -1.442695, %v1376_v2  ;;  %v1867_v37 = vmul.f32 -1.442695, %v1378_v3  ;;  %v2025_v49 = vld [vmem:[#allocation9] sm:$0xff]  }
 0x678   :  { %2113 = vpow2.f32 %v1865_v48 }
 0x679   :  { %2115 = vpow2.f32 %v1866_v36  ;;  %v2324_v36 = vmov 0.0  }
 0x67a   :  { %2117 = vpow2.f32 %v1867_v37  ;;  %v2026_v37 = vld [vmem:[#allocation9 + $0x8] sm:$0xff]  }
 0x67b   :  { %2119 = vtanh.f32 %v1377_v63 }
 0x682   :  { %v2114_v50 = vpop.eup %2113 }
 0x683   :  { %v2116_v51 = vpop.eup %2115  ;;  %v1382_v52 = vadd.f32 1.0, %v2114_v50  ;;  %v2027_v50 = vld [vmem:[#allocation9 + $0x10] sm:$0xff]  }
 0x684   :  { %v1388_v54 = vadd.f32 1.0, %v2116_v51  ;;  %v2118_v55 = vpop.eup %2117  ;;  %v2028_v51 = vld [vmem:[#allocation9 + $0x18] sm:$0xff]  }
 0x685   :  { %2121 = vrcp.f32 %v1382_v52  ;;  %v2120_v56 = vpop.eup %2119  ;;  %v1395_v15 = vadd.f32 1.0, %v2118_v55  ;;  %v2029_v52 = vld [vmem:[#allocation9 + $0x20] sm:$0xff]   ;;  %v2031_v55 = vld [vmem:[#allocation9 + $0x30] sm:$0xff]  }
 0x686   :  { %2123 = vrcp.f32 %v1388_v54  ;;  %v2030_v54 = vld [vmem:[#allocation9 + $0x28] sm:$0xff]  }
 0x687   :  { %2125 = vrcp.f32 %v1395_v15 }
 0x68f   :  { %v2122_v57 = vpop.eup %2121 }
 0x690   :  { %v2124_v62 = vpop.eup %2123  ;;  %v1399_v13 = vmul.f32 %v2122_v57, %v2120_v56  ;;  %v2032_v56 = vld [vmem:[#allocation9 + $0x38] sm:$0xff]  }
 0x691   :  { %v1398_v17 = vmul.f32 %v2124_v62, %v2830_v25  ;;  %v2126_v18 = vpop.eup %2125  ;;  %v2191_v25 = vld [vmem:[#allocation8 + $0xc0] ss:$16 sps:$4 sm:$0xff]  }
 0x693   :  { %v2912_v16 = vadd.f32 %v1399_v13, %v1398_v17  ;;  %v3013_v13 = vld [vmem:[#allocation33_spill] sm:$0xff]  ;;  %v3014_v17 = vld [vmem:[#allocation34_spill] sm:$0xff] }
 0x695   :  { %2127 = vtanh.f32 %v2912_v16 }
 0x69f   :  { %v2128_v0 = vpop.eup %2127 }
 0x6a0   :  { %v1402_v19 = vmul.f32 %v2128_v0, %v2126_v18 }
 0x6a2   :  { %v1410_v20 = vpack.c.bf16 %v1402_v19, %v1402_v19  ;;  %v3015_v19 = vld [vmem:[#allocation35_spill] sm:$0xff] }
 0x6a4   :  { %1444 = vmatmul.mubr.bf16.vlgmr.msra.gmra.mrb[40].mxu0 %v1410_v20  ;;  %1485 = vmatmul.mubr.bf16.vlgmr.msra.gmra.mrb[40].mxu1 %v1410_v20 }
 0x6a5   :  { %1530 = vmatpush1.bf16.msra.mxu0 %v2833_v31  ;;  %1571 = vmatpush1.bf16.msra.mxu1 %v2836_v35  ;;  %v2196_v31 = vld [vmem:[#allocation8 + $0xe8] ss:$16 sps:$4 sm:$0xff]  }
 0x6a6   :  { %1531 = vmatprep.subr.bf16.mxu0 %v2839_v53  ;;  %1572 = vmatprep.subr.bf16.mxu1 %v2842_v28  ;;  %v3009_v28 = vld [vmem:[#allocation29_spill] sm:$0xff] }
 0x6a7   :  { %1561 = vmatprep.mubr.bf16.mxu0 %v2995_v21  ;;  %1602 = vmatprep.mubr.bf16.mxu1 %v2995_v21  ;;  %v2187_v21 = vld [vmem:[#allocation8 + $0xa0] ss:$16 sps:$4 sm:$0xff]  }
 0x6a9   :  { %1532 = vmatpush1.bf16.msra.mxu0 %v2847_v24  ;;  %1573 = vmatpush1.bf16.msra.mxu1 %v2850_v10  ;;  %v3010_v10 = vld [vmem:[#allocation30_spill] sm:$0xff] }
 0x6aa   :  { %1533 = vmatprep.subr.bf16.mxu0 %v2853_v32  ;;  %1574 = vmatprep.subr.bf16.mxu1 %v2856_v9 }
 0x6ad   :  { %1534 = vmatpush1.bf16.msra.mxu0 %v2859_v12  ;;  %1575 = vmatpush1.bf16.msra.mxu1 %v2862_v7  ;;  %v3011_v7 = vld [vmem:[#allocation31_spill] sm:$0xff] }
 0x6ae   :  { %1535 = vmatprep.subr.bf16.mxu0 %v2865_v11  ;;  %1576 = vmatprep.subr.bf16.mxu1 %v2868_v6  ;;  %v3012_v6 = vld [vmem:[#allocation32_spill] sm:$0xff] }
 0x6b1   :  { %1536 = vmatpush1.bf16.msra.mxu0 %v2871_v22  ;;  %1577 = vmatpush1.bf16.msra.mxu1 %v2874_v29 }
 0x6b2   :  { %1537 = vmatprep.subr.bf16.mxu0 %v2877_v30  ;;  %1578 = vmatprep.subr.bf16.mxu1 %v2880_v14 }
 0x6b5   :  { %1538 = vmatpush1.bf16.msra.mxu0 %v2883_v38  ;;  %1579 = vmatpush1.bf16.msra.mxu1 %v2886_v39 }
 0x6b6   :  { %1539 = vmatprep.subr.bf16.mxu0 %v2889_v40  ;;  %1580 = vmatprep.subr.bf16.mxu1 %v2892_v41 }
 0x6b9   :  { %1540 = vmatpush1.bf16.msra.mxu0 %v2187_v21  ;;  %1581 = vmatpush1.bf16.msra.mxu1 %v2188_v26  ;;  %v3016_v21 = vld [vmem:[#allocation36_spill] sm:$0xff] }
 0x6ba   :  { %1541 = vmatprep.subr.bf16.mxu0 %v2189_v8  ;;  %1582 = vmatprep.subr.bf16.mxu1 %v2190_v23 }
 0x6bd   :  { %1542 = vmatpush1.bf16.msra.mxu0 %v2191_v25  ;;  %1583 = vmatpush1.bf16.msra.mxu1 %v2192_v27 }
 0x6be   :  { %1543 = vmatprep.subr.bf16.mxu0 %v2193_v44  ;;  %1584 = vmatprep.subr.bf16.mxu1 %v2194_v33 }
 0x6c1   :  { %1544 = vmatpush1.bf16.msra.mxu0 %v2195_v34  ;;  %1585 = vmatpush1.bf16.msra.mxu1 %v2196_v31 }
 0x6c2   :  { %1893 = vmatprep.subr.bf16.mxu0 %v2324_v36 }
 0x777   :  { %v1445_v35 = vpop.f32.mrb[40].mxu0  ;;  %v1486_v53 = vpop.f32.mrb[40].mxu1 }
 0x778   :  { %v1493_v24 = vadd.f32 %v1445_v35, %v3009_v28  ;;  %v1495_v32 = vadd.f32 %v1486_v53, %v3010_v10  ;;  %v1447_v9 = vpop.f32.mrb[41].mxu0  ;;  %v1488_v12 = vpop.f32.mrb[41].mxu1 }
 0x779   :  { %v1494_v11 = vadd.f32 %v1447_v9, %v3011_v7  ;;  %v1496_v22 = vadd.f32 %v1488_v12, %v3012_v6  ;;  %v1449_v29 = vpop.f32.mrb[42].mxu0  ;;  %v1490_v30 = vpop.f32.mrb[42].mxu1 }
 0x77a   :  { %v1868_v14 = vmul.f32 -1.442695, %v1493_v24  ;;  %v1450_v38 = vpop.f32.mrb[43].mxu0  ;;  %v1491_v39 = vpop.f32.mrb[43].mxu1 }
 0x77b   :  { %v1869_v40 = vmul.f32 -1.442695, %v1494_v11  ;;  %v1870_v41 = vmul.f32 -1.442695, %v1496_v22  ;;  %v1874_v38 = vld [vmem:[%s2970_s5] ss:$0 sm:$0xff] }
 0x77c   :  { %2129 = vpow2.f32 %v1868_v14 }
 0x77d   :  { %2131 = vpow2.f32 %v1869_v40 }
 0x77e   :  { %2133 = vpow2.f32 %v1870_v41 }
 0x77f   :  { %2135 = vtanh.f32 %v1495_v32 }
 0x786   :  { %v2130_v58 = vpop.eup %2129 }
 0x787   :  { %v2132_v59 = vpop.eup %2131  ;;  %v1500_v60 = vadd.f32 1.0, %v2130_v58 }
 0x788   :  { %v1506_v61 = vadd.f32 1.0, %v2132_v59  ;;  %v2134_v42 = vpop.eup %2133 }
 0x789   :  { %2137 = vrcp.f32 %v1500_v60  ;;  %v2136_v63 = vpop.eup %2135  ;;  %v1513_v2 = vadd.f32 1.0, %v2134_v42 }
 0x78a   :  { %2139 = vrcp.f32 %v1506_v61 }
 0x78b   :  { %2141 = vrcp.f32 %v1513_v2 }
 0x793   :  { %v2138_v43 = vpop.eup %2137 }
 0x794   :  { %v2140_v1 = vpop.eup %2139  ;;  %v1517_v45 = vmul.f32 %v2138_v43, %v2136_v63 }
 0x795   :  { %v1516_v46 = vmul.f32 %v2140_v1, %v2912_v16  ;;  %v2142_v47 = vpop.eup %2141 }
 0x797   :  { %v2942_v3 = vadd.f32 %v1517_v45, %v1516_v46 }
 0x799   :  { %2143 = vtanh.f32 %v2942_v3 }
 0x7a3   :  { %v2144_v4 = vpop.eup %2143 }
 0x7a4   :  { %v1520_v48 = vmul.f32 %v2144_v4, %v2142_v47 }
 0x7a6   :  { %v1528_v5 = vpack.c.bf16 %v1520_v48, %v1520_v48 }
 0x7a8   :  { %1562 = vmatmul.mubr.bf16.vlgmr.msra.gmra.mrb[44].mxu0 %v1528_v5  ;;  %1603 = vmatmul.mubr.bf16.vlgmr.msra.gmra.mrb[44].mxu1 %v1528_v5 }
 0x7a9   :  { %1894 = vmatpush3.bf16.msra.mxu0 %v2025_v49  ;;  %1909 = vmatprep.mubr.msk.bf16.mxu0 %vm2325_vm0, %v2324_v36 }
 0x7aa   :  { %1895 = vmatprep.subr.bf16.mxu0 %v2324_v36 }
 0x7ad   :  { %1896 = vmatpush3.bf16.msra.mxu0 %v2026_v37 }
 0x7ae   :  { %1897 = vmatprep.subr.bf16.mxu0 %v2324_v36 }
 0x7b1   :  { %1898 = vmatpush3.bf16.msra.mxu0 %v2027_v50 }
 0x7b2   :  { %1899 = vmatprep.subr.bf16.mxu0 %v2324_v36 }
 0x7b5   :  { %1900 = vmatpush3.bf16.msra.mxu0 %v2028_v51 }
 0x7b6   :  { %1901 = vmatprep.subr.bf16.mxu0 %v2324_v36 }
 0x7b9   :  { %1902 = vmatpush3.bf16.msra.mxu0 %v2029_v52 }
 0x7ba   :  { %1903 = vmatprep.subr.bf16.mxu0 %v2324_v36 }
 0x7bd   :  { %1904 = vmatpush3.bf16.msra.mxu0 %v2030_v54 }
 0x7be   :  { %1905 = vmatprep.subr.bf16.mxu0 %v2324_v36 }
 0x7c1   :  { %1906 = vmatpush3.bf16.msra.mxu0 %v2031_v55 }
 0x7c2   :  { %1907 = vmatprep.subr.bf16.mxu0 %v2324_v36 }
 0x7c5   :  { %1908 = vmatpush3.bf16.msra.mxu0 %v2032_v56 }
 0x87b   :  { %v1563_v57 = vpop.f32.mrb[44].mxu0  ;;  %v1604_v62 = vpop.f32.mrb[44].mxu1 }
 0x87c   :  { %v1611_v15 = vadd.f32 %v1563_v57, %v3013_v13  ;;  %v1613_v16 = vadd.f32 %v1604_v62, %v3014_v17  ;;  %v1565_v18 = vpop.f32.mrb[45].mxu0  ;;  %v1606_v0 = vpop.f32.mrb[45].mxu1 }
 0x87d   :  { %v1612_v20 = vadd.f32 %v1565_v18, %v3015_v19  ;;  %v1614_v26 = vadd.f32 %v1606_v0, %v3016_v21  ;;  %v1567_v8 = vpop.f32.mrb[46].mxu0  ;;  %v1608_v23 = vpop.f32.mrb[46].mxu1 }
 0x87e   :  { %v1871_v25 = vmul.f32 -1.442695, %v1611_v15  ;;  %v1568_v27 = vpop.f32.mrb[47].mxu0  ;;  %v1609_v44 = vpop.f32.mrb[47].mxu1 }
 0x87f   :  { %v1872_v33 = vmul.f32 -1.442695, %v1612_v20  ;;  %v1873_v34 = vmul.f32 -1.442695, %v1614_v26 }
 0x880   :  { %2145 = vpow2.f32 %v1871_v25 }
 0x881   :  { %2147 = vpow2.f32 %v1872_v33 }
 0x882   :  { %2149 = vpow2.f32 %v1873_v34 }
 0x883   :  { %2151 = vtanh.f32 %v1613_v16 }
 0x88a   :  { %v2146_v31 = vpop.eup %2145 }
 0x88b   :  { %v2148_v35 = vpop.eup %2147  ;;  %v1618_v53 = vadd.f32 1.0, %v2146_v31 }
 0x88c   :  { %v1624_v28 = vadd.f32 1.0, %v2148_v35  ;;  %v2150_v24 = vpop.eup %2149 }
 0x88d   :  { %2153 = vrcp.f32 %v1618_v53  ;;  %v2152_v10 = vpop.eup %2151  ;;  %v1631_v7 = vadd.f32 1.0, %v2150_v24 }
 0x88e   :  { %2155 = vrcp.f32 %v1624_v28 }
 0x88f   :  { %2157 = vrcp.f32 %v1631_v7 }
 0x897   :  { %v2154_v32 = vpop.eup %2153 }
 0x898   :  { %v2156_v9 = vpop.eup %2155  ;;  %v1635_v12 = vmul.f32 %v2154_v32, %v2152_v10 }
 0x899   :  { %v1634_v11 = vmul.f32 %v2156_v9, %v2942_v3  ;;  %v2158_v22 = vpop.eup %2157 }
 0x89b   :  { %v1636_v6 = vadd.f32 %v1635_v12, %v1634_v11 }
 0x89d   :  { %2159 = vtanh.f32 %v1636_v6 }
 0x8a7   :  { %v2160_v29 = vpop.eup %2159 }
 0x8a8   :  { %v1638_v30 = vmul.f32 %v2160_v29, %v2158_v22 }
 0x8aa   :  { %v1639_v14 = vpack.c.bf16 %v1638_v30, %v1638_v30 }
 0x8ac   :  { %1910 = vmatmul.mubr.bf16.vlgmr.msra.gmra.mrb[48].mxu0 %v1639_v14 }
 0x97f   :  { %v1745_v39 = vpop.f32.mrb[48].mxu0 }
 0x980   :  { %v1746_v40 = vadd.f32 %v1874_v38, %v1745_v39  ;;  %v1911_v41 = vpop.f32.mrb[49].mxu0 }
 0x981   :  { %v1748_v58 = vpop.f32.mrb[50].mxu0 }
 0x982   :  { %v1883_v59 = vmul.f32 -1.442695, %v1746_v40  ;;  %v1912_v60 = vpop.f32.mrb[51].mxu0 }
 0x984   :  { %2161 = vpow2.f32 %v1883_v59 }
 0x98e   :  { %v2162_v61 = vpop.eup %2161 }
 0x98f   :  { %v1754_v42 = vadd.f32 1.0, %v2162_v61 }
 0x991   :  { %2163 = vrcp.f32 %v1754_v42 }
 0x99b   :  { %v2164_v63 = vpop.eup %2163 }
 0x99c   :  { %1757 = vst [vmem:[#allocation11] sm:$0xff] %v2164_v63 }
 0x99d   :  { %2296 = shalt.err (!%p2293_p8)
}
 0x99e   :  { %s2297_s27 = scalar_lea.hbm %s2971_s6, 128 }
 0x99f   :  { %p2298_p9 = scmp.ne.s32.totalorder %s2971_s6, %s2297_s27  ;;  %p2301_p10 = scmp.lt.u32.totalorder %s2297_s27, %s2971_s6 }
 0x9a1   :  { %p2303_p11 = pnand %p2301_p10, %p2298_p9 }
 0x9a3   :  { %2306 = shalt.err (!%p2303_p11)
}
 0x9a4   :  { %1767 = dma.vmem_to_hbm [thread:$0]  %s1765_s24, 128, %s2971_s6, [#allocation5]  }
 0x9a5   :  { %2313 = dma.done.wait [#allocation5], 128  }
 0x9a6   :  { %2314 = vsyncadd [#allocation5], 4294967168 }
 0x9a7   :  { %1771 = vsyncpa [#allocation4], 1 }
 0x9a8   :  { %1772 = vsyncpa [#allocation7], 1 }
 0x9a9   :  { %1773 = vsyncpa [#allocation10], 1 }
 0x9aa   :  { %1774 = vsyncpa [#allocation5], 1 }

</bundles_post_ra>
